<compile_context>
chip_gen: v7x
topology: tpu7x:2x2x1
jax: 0.10.0
libtpu: 0.0.40
codegen_flags: <defaults>
</compile_context>

<pallas_src>
import numpy as np
import jax
import jax.numpy as jnp
from jax.experimental import pallas as pl
from jax.experimental.pallas import tpu as pltpu


# ---------------------------------------------------------------------------
# Host-side constant builders (tiny, batch-block independent)
# ---------------------------------------------------------------------------
def _tap_masks(nb, h, w):
    """masks[t, p] = 1 iff tap t of a 3x3/pad-1 conv is in-bounds for pixel p.

    p = (b*h + y)*w + x over a batch block of `nb` images.  The masks also kill
    any roll wrap-around across row / image boundaries."""
    m = nb * h * w
    masks = np.zeros((9, m), np.float32)
    for t in range(9):
        dy, dx = divmod(t, 3)
        for b in range(nb):
            for y in range(h):
                if not (0 <= y + dy - 1 < h):
                    continue
                for x in range(w):
                    if 0 <= x + dx - 1 < w:
                        masks[t, (b * h + y) * w + x] = 1.0
    return masks


def _subsample_matrix(nb, h, w, stride):
    """One-hot (nb*h*w, nb*ho*wo) matrix selecting the stride-s output pixels."""
    ho = (h - 1) // stride + 1
    wo = (w - 1) // stride + 1
    s = np.zeros((nb * h * w, nb * ho * wo), np.float32)
    for b in range(nb):
        for oy in range(ho):
            for ox in range(wo):
                s[(b * h + stride * oy) * w + stride * ox,
                  (b * ho + oy) * wo + ox] = 1.0
    return s, ho, wo


# ---------------------------------------------------------------------------
# Fused kernel: the whole NetworkBlock3 stack in one pallas_call grid step.
# ---------------------------------------------------------------------------
def _build_kernel(n_layers, equal0, stride0, cp, w_img_in, w_img_out, m_in, m_out):

    def conv3x3(act, wmat, masks, row_w, m):
        # act: (cp, m) f32; wmat: (cp, 9*cp); masks: 9 x (1, m) 0/1 arrays.
        taps = []
        for t in range(9):
            dy, dx = divmod(t, 3)
            delta = (dy - 1) * row_w + (dx - 1)
            if delta == 0:
                taps.append(act)                                   # centre tap, always valid
            else:
                shifted = pltpu.roll(act, shift=(-delta) % m, axis=1)   # XLU lane shift
                taps.append(shifted * masks[t])                          # VPU boundary mask
        tap_slab = jnp.concatenate(taps, axis=0)                   # (9*cp, m), sublane-stacked
        # Single fused matmul per conv (MXU does the tap accumulation).
        return jnp.dot(wmat, tap_slab, preferred_element_type=jnp.float32)

    def kernel(*refs):
        out_ref = refs[-1]
        it = iter(refs[:-1])
        x_ref = next(it)
        s_ref = next(it) if stride0 != 1 else None
        maskin_ref = next(it) if stride0 != 1 else None
        maskout_ref = next(it)
        bn_ref = next(it)
        w_ref = next(it)

        # Hoisted once: mask rows shared by all convs of a geometry.
        masks_out = [maskout_ref[pl.ds(t, 1), :] for t in range(9)]
        masks_in = ([maskin_ref[pl.ds(t, 1), :] for t in range(9)]
                    if stride0 != 1 else masks_out)

        def wconv(ci):
            return w_ref[pl.ds(cp * ci, cp), :]                    # (cp, 9*cp)

        def bncol(idx):
            return bn_ref[:, pl.ds(idx, 1)]                        # (cp, 1)

        cur = x_ref[...]                                           # (cp, m_in)
        for li in range(n_layers):                                 # unrolled at trace time
            s1, b1 = bncol(4 * li + 0), bncol(4 * li + 1)
            s2, b2 = bncol(4 * li + 2), bncol(4 * li + 3)

            # BN1 + ReLU (VPU prologue of conv1).
            act = jnp.maximum(cur * s1 + b1, 0.0)

            if li == 0 and stride0 != 1:
                # stride-s conv1 = stride-1 conv at input geometry + one small
                # one-hot subsample matmul (also produces the strided shortcut act).
                o_full = conv3x3(act, wconv(0), masks_in, w_img_in, m_in)
                cat = jnp.concatenate([o_full, act], axis=0)       # (2*cp, m_in)
                sub = jnp.dot(cat, s_ref[...],
                              preferred_element_type=jnp.float32)  # (2*cp, m_out)
                o = sub[0:cp, :]
                act_s = sub[cp:2 * cp, :]
            else:
                o = conv3x3(act, wconv(2 * li), masks_out, w_img_out, m_out)
                act_s = act

            # BN2 + ReLU.
            o = jnp.maximum(o * s2 + b2, 0.0)
            # TODO(synk): F.dropout(dropRate) would apply here; dropRate=0.0 -> identity.

            # conv2 (stride 1, output geometry).
            o = conv3x3(o, wconv(2 * li + 1), masks_out, w_img_out, m_out)

            # Residual branch (fused epilogue).
            if li == 0 and not equal0:
                wsc = w_ref[pl.ds(cp * 2 * n_layers, cp), pl.ds(0, cp)]   # (cp, cp)
                res = jnp.dot(wsc, act_s, preferred_element_type=jnp.float32)
            else:
                res = cur
            cur = res + o

        out_ref[...] = cur

    return kernel


def build_network_block3(layer_params, input_shape):
    """Returns forward(x_nhwc) -> y_nhwc backed by one fused pallas_call."""
    n, h, w, cin = input_shape
    n_layers = len(layer_params)
    cout = int(layer_params[0]["conv1"].shape[-1])
    s0 = int(layer_params[0]["stride"])
    equal0 = bool(layer_params[0]["equal"])
    assert s0 == 1 or not equal0, "a strided first layer must use the conv shortcut"

    # Channels padded to a full sublane tile so every slab / tap stack is aligned.
    cp = int(-(-max(cin, cout) // 8) * 8)

    ho = (h - 1) // s0 + 1
    wo = (w - 1) // s0 + 1

    # Batch-block size: smallest block keeping the per-step output slab lane-dense
    # (>=128 lanes); batch blocks run on a "parallel" grid axis (v7x megacore).
    nb = min(n, max(1, -(-128 // (ho * wo))))
    while n % nb:
        nb -= 1
    m_in, m_out = nb * h * w, nb * ho * wo
    grid = (n // nb,)

    # ---- packed constants: few fat DMAs instead of ~20 tiny ones -------------
    mask_out = _tap_masks(nb, ho, wo)                              # (9, m_out)
    const_np = []
    if s0 != 1:
        s_mat, _, _ = _subsample_matrix(nb, h, w, s0)              # (m_in, m_out)
        const_np += [s_mat, _tap_masks(nb, h, w)]                  # + (9, m_in)
    const_np.append(mask_out)

    bn_packed = np.zeros((cp, 4 * n_layers), np.float32)           # cols: [s1,b1,s2,b2]*layer
    w_packed = np.zeros(((2 * n_layers + 1) * cp, 9 * cp), np.float32)
    for li, p in enumerate(layer_params):
        for k, name in enumerate(("bn1_scale", "bn1_bias", "bn2_scale", "bn2_bias")):
            v = np.asarray(p[name])
            bn_packed[:v.shape[0], 4 * li + k] = v                 # padded chans: scale=bias=0
        for which, name in enumerate(("conv1", "conv2")):
            wnp = np.asarray(p[name])                              # (3, 3, ci, co)
            ci, co = wnp.shape[2], wnp.shape[3]
            r0 = cp * (2 * li + which)
            for dy in range(3):
                for dx in range(3):
                    t = 3 * dy + dx
                    w_packed[r0:r0 + co, cp * t:cp * t + ci] = wnp[dy, dx].T
        if not p["equal"]:
            sc = np.asarray(p["shortcut"])                         # (ci, co)
            r0 = cp * 2 * n_layers
            w_packed[r0:r0 + sc.shape[1], :sc.shape[0]] = sc.T
    const_np += [bn_packed, w_packed]
    const_args = [jnp.asarray(a) for a in const_np]

    kernel = _build_kernel(n_layers, equal0, s0, cp, w, wo, m_in, m_out)

    in_specs = [pl.BlockSpec((cp, m_in), lambda b: (0, b))]
    in_specs += [pl.BlockSpec(a.shape, lambda b: (0, 0)) for a in const_np]
    out_specs = pl.BlockSpec((cp, m_out), lambda b: (0, b))

    # VMEM budget derived from the actual resident buffers (double-buffered
    # blocks + constants + largest in-flight intermediates), with 2x headroom.
    f32 = 4
    resident = 2 * (cp * m_in + cp * m_out) * f32
    resident += 2 * sum(int(np.prod(a.shape)) for a in const_np) * f32
    resident += (9 * cp + 4 * cp + 2 * cp) * m_in * f32            # tap slab / act / cat
    vmem_limit = int(min(32 * 1024 * 1024, max(4 * 1024 * 1024, 2 * resident)))

    call = pl.pallas_call(
        kernel,
        out_shape=jax.ShapeDtypeStruct((cp, n * ho * wo), jnp.float32),
        grid=grid,
        in_specs=in_specs,
        out_specs=out_specs,
        compiler_params=pltpu.CompilerParams(
            dimension_semantics=("parallel",),
            vmem_limit_bytes=vmem_limit,
        ),
    )

    def forward(x_nhwc):
        # NHWC -> (Cp, N*H*W): channels on sublanes (zero-padded to cp),
        # pixels on lanes (lane-dense).
        xp = jnp.pad(x_nhwc, ((0, 0), (0, 0), (0, 0), (0, cp - cin)))
        x2d = jnp.transpose(xp.reshape(n * h * w, cp), (1, 0))
        y2d = call(x2d, *const_args)
        y = jnp.transpose(y2d, (1, 0)).reshape(n, ho, wo, cp)
        return y[..., :cout]

    return forward


# --------------------------- deterministic params ---------------------------
def init_bn_folded(key, c):
    k1, k2, k3, k4 = jax.random.split(key, 4)
    gamma = 1.0 + 0.1 * jax.random.normal(k1, (c,), jnp.float32)
    beta = 0.1 * jax.random.normal(k2, (c,), jnp.float32)
    mean = 0.1 * jax.random.normal(k3, (c,), jnp.float32)
    var = 1.0 + 0.1 * jnp.abs(jax.random.normal(k4, (c,), jnp.float32))
    scale = gamma / jnp.sqrt(var + 1e-5)
    bias = beta - mean * scale
    return scale, bias


def init_conv3x3(key, cin, cout):
    std = (2.0 / (9 * cin)) ** 0.5
    return std * jax.random.normal(key, (3, 3, cin, cout), jnp.float32)


def init_network_block3(key, nb_layers, in_planes, out_planes, stride):
    """(nb_layers-2) block1 layers + 2 block2 layers, all BasicBlocks."""
    n_total = (int(nb_layers) - 2) + 2
    layers = []
    for i in range(n_total):
        cin = in_planes if i == 0 else out_planes
        st = stride if i == 0 else 1
        key, k0, k1, k2, k3, k4 = jax.random.split(key, 6)
        p = {}
        p["bn1_scale"], p["bn1_bias"] = init_bn_folded(k0, cin)
        p["conv1"] = init_conv3x3(k1, cin, out_planes)
        p["bn2_scale"], p["bn2_bias"] = init_bn_folded(k2, out_planes)
        p["conv2"] = init_conv3x3(k3, out_planes, out_planes)
        p["stride"] = st
        p["equal"] = (cin == out_planes)
        if not p["equal"]:
            p["shortcut"] = ((2.0 / cin) ** 0.5) * jax.random.normal(
                k4, (cin, out_planes), jnp.float32)
        layers.append(p)
    return layers


# ------------------------ pure-XLA reference (check) -------------------------
def reference_forward(x, layer_params):
    for p in layer_params:
        act = jnp.maximum(x * p["bn1_scale"] + p["bn1_bias"], 0.0)
        o = jax.lax.conv_general_dilated(
            act, p["conv1"], (p["stride"], p["stride"]), ((1, 1), (1, 1)),
            dimension_numbers=("NHWC", "HWIO", "NHWC"),
            precision=jax.lax.Precision.HIGHEST)
        o = jnp.maximum(o * p["bn2_scale"] + p["bn2_bias"], 0.0)
        o = jax.lax.conv_general_dilated(
            o, p["conv2"], (1, 1), ((1, 1), (1, 1)),
            dimension_numbers=("NHWC", "HWIO", "NHWC"),
            precision=jax.lax.Precision.HIGHEST)
        if p["equal"]:
            res = x
        else:
            s = p["stride"]
            res = jnp.einsum("nhwc,cd->nhwd", act[:, ::s, ::s, :], p["shortcut"],
                             precision=jax.lax.Precision.HIGHEST)
        x = res + o
    return x


# ----------------------------------- main ------------------------------------
if __name__ == "__main__":
    key = jax.random.PRNGKey(0)
    kx, kp = jax.random.split(key)

    # PyTorch input would be NCHW (2, 4, 16, 16); the kernel uses NHWC.
    x_nchw = jax.random.normal(kx, (2, 4, 16, 16), jnp.float32)
    x = jnp.transpose(x_nchw, (0, 2, 3, 1))                      # (2, 16, 16, 4)

    # NetworkBlock3(nb_layers=4, in_planes=4, out_planes=8, block1, block2,
    #               stride=2, dropRate=0.0) with BasicBlock for block1/block2.
    params = init_network_block3(kp, nb_layers=4, in_planes=4, out_planes=8, stride=2)

    forward = build_network_block3(params, x.shape)
    y = jax.block_until_ready(forward(x))

    assert y.shape == (2, 8, 8, 8), y.shape                      # NHWC (N, H/2, W/2, out)
    assert bool(jnp.all(jnp.isfinite(y)))

    # Validate the fused kernel against a pure-XLA reference (tight f32 tolerance).
    y_ref = jax.block_until_ready(reference_forward(x, params))
    err = float(jnp.max(jnp.abs(y - y_ref)))
    scale = float(jnp.max(jnp.abs(y_ref)))
    assert err <= 1e-3 * (scale + 1.0), ("mismatch vs reference", err, scale)

    print("KERNEL_OK")
</pallas_src>

<mosaic_0001>
module attributes {stable_mosaic.version = 11 : i64} {
  func.func @kernel(%arg0: i32, %arg1: memref<8x512xf32, #tpu.memory_space<vmem>>, %arg2: memref<512x128xf32, #tpu.memory_space<vmem>>, %arg3: memref<9x512xf32, #tpu.memory_space<vmem>>, %arg4: memref<9x128xf32, #tpu.memory_space<vmem>>, %arg5: memref<8x16xf32, #tpu.memory_space<vmem>>, %arg6: memref<72x72xf32, #tpu.memory_space<vmem>>, %arg7: memref<8x128xf32, #tpu.memory_space<vmem>>) attributes {dimension_semantics = [#tpu.dimension_semantics<parallel>], iteration_bounds = array<i64: 1>, scalar_prefetch = 0 : i64, scratch_operands = 0 : i64, tpu.core_type = #tpu.core_type<tc>, window_params = [{transform_indices = @transform_0, window_bounds = array<i64: 8, 512>}, {pipeline_mode = #tpu.pipeline_mode<synchronous>, transform_indices = @transform_1, window_bounds = array<i64: 512, 128>}, {pipeline_mode = #tpu.pipeline_mode<synchronous>, transform_indices = @transform_2, window_bounds = array<i64: 9, 512>}, {pipeline_mode = #tpu.pipeline_mode<synchronous>, transform_indices = @transform_3, window_bounds = array<i64: 9, 128>}, {pipeline_mode = #tpu.pipeline_mode<synchronous>, transform_indices = @transform_4, window_bounds = array<i64: 8, 16>}, {pipeline_mode = #tpu.pipeline_mode<synchronous>, transform_indices = @transform_5, window_bounds = array<i64: 72, 72>}, {transform_indices = @transform_6, window_bounds = array<i64: 8, 128>}]} {
    %c0 = arith.constant 0 : index
    %c0_0 = arith.constant 0 : index
    %0 = vector.load %arg4[%c0, %c0_0] : memref<9x128xf32, #tpu.memory_space<vmem>>, vector<1x128xf32>
    %c1 = arith.constant 1 : index
    %c0_1 = arith.constant 0 : index
    %1 = vector.load %arg4[%c1, %c0_1] : memref<9x128xf32, #tpu.memory_space<vmem>>, vector<1x128xf32>
    %c2 = arith.constant 2 : index
    %c0_2 = arith.constant 0 : index
    %2 = vector.load %arg4[%c2, %c0_2] : memref<9x128xf32, #tpu.memory_space<vmem>>, vector<1x128xf32>
    %c3 = arith.constant 3 : index
    %c0_3 = arith.constant 0 : index
    %3 = vector.load %arg4[%c3, %c0_3] : memref<9x128xf32, #tpu.memory_space<vmem>>, vector<1x128xf32>
    %c5 = arith.constant 5 : index
    %c0_4 = arith.constant 0 : index
    %4 = vector.load %arg4[%c5, %c0_4] : memref<9x128xf32, #tpu.memory_space<vmem>>, vector<1x128xf32>
    %c6 = arith.constant 6 : index
    %c0_5 = arith.constant 0 : index
    %5 = vector.load %arg4[%c6, %c0_5] : memref<9x128xf32, #tpu.memory_space<vmem>>, vector<1x128xf32>
    %c7 = arith.constant 7 : index
    %c0_6 = arith.constant 0 : index
    %6 = vector.load %arg4[%c7, %c0_6] : memref<9x128xf32, #tpu.memory_space<vmem>>, vector<1x128xf32>
    %c8 = arith.constant 8 : index
    %c0_7 = arith.constant 0 : index
    %7 = vector.load %arg4[%c8, %c0_7] : memref<9x128xf32, #tpu.memory_space<vmem>>, vector<1x128xf32>
    %c0_8 = arith.constant 0 : index
    %c0_9 = arith.constant 0 : index
    %8 = vector.load %arg3[%c0_8, %c0_9] : memref<9x512xf32, #tpu.memory_space<vmem>>, vector<1x512xf32>
    %c1_10 = arith.constant 1 : index
    %c0_11 = arith.constant 0 : index
    %9 = vector.load %arg3[%c1_10, %c0_11] : memref<9x512xf32, #tpu.memory_space<vmem>>, vector<1x512xf32>
    %c2_12 = arith.constant 2 : index
    %c0_13 = arith.constant 0 : index
    %10 = vector.load %arg3[%c2_12, %c0_13] : memref<9x512xf32, #tpu.memory_space<vmem>>, vector<1x512xf32>
    %c3_14 = arith.constant 3 : index
    %c0_15 = arith.constant 0 : index
    %11 = vector.load %arg3[%c3_14, %c0_15] : memref<9x512xf32, #tpu.memory_space<vmem>>, vector<1x512xf32>
    %c5_16 = arith.constant 5 : index
    %c0_17 = arith.constant 0 : index
    %12 = vector.load %arg3[%c5_16, %c0_17] : memref<9x512xf32, #tpu.memory_space<vmem>>, vector<1x512xf32>
    %c6_18 = arith.constant 6 : index
    %c0_19 = arith.constant 0 : index
    %13 = vector.load %arg3[%c6_18, %c0_19] : memref<9x512xf32, #tpu.memory_space<vmem>>, vector<1x512xf32>
    %c7_20 = arith.constant 7 : index
    %c0_21 = arith.constant 0 : index
    %14 = vector.load %arg3[%c7_20, %c0_21] : memref<9x512xf32, #tpu.memory_space<vmem>>, vector<1x512xf32>
    %c8_22 = arith.constant 8 : index
    %c0_23 = arith.constant 0 : index
    %15 = vector.load %arg3[%c8_22, %c0_23] : memref<9x512xf32, #tpu.memory_space<vmem>>, vector<1x512xf32>
    %c0_24 = arith.constant 0 : index
    %c0_25 = arith.constant 0 : index
    %16 = vector.load %arg1[%c0_24, %c0_25] : memref<8x512xf32, #tpu.memory_space<vmem>>, vector<8x512xf32>
    %c0_26 = arith.constant 0 : index
    %c0_27 = arith.constant 0 : index
    %17 = vector.load %arg5[%c0_26, %c0_27] : memref<8x16xf32, #tpu.memory_space<vmem>>, vector<8x1xf32>
    %c0_28 = arith.constant 0 : index
    %c1_29 = arith.constant 1 : index
    %18 = vector.load %arg5[%c0_28, %c1_29] : memref<8x16xf32, #tpu.memory_space<vmem>>, vector<8x1xf32>
    %c0_30 = arith.constant 0 : index
    %c2_31 = arith.constant 2 : index
    %19 = vector.load %arg5[%c0_30, %c2_31] : memref<8x16xf32, #tpu.memory_space<vmem>>, vector<8x1xf32>
    %c0_32 = arith.constant 0 : index
    %c3_33 = arith.constant 3 : index
    %20 = vector.load %arg5[%c0_32, %c3_33] : memref<8x16xf32, #tpu.memory_space<vmem>>, vector<8x1xf32>
    %21 = vector.broadcast %17 : vector<8x1xf32> to vector<8x512xf32>
    %22 = arith.mulf %16, %21 : vector<8x512xf32>
    %23 = vector.broadcast %18 : vector<8x1xf32> to vector<8x512xf32>
    %24 = arith.addf %22, %23 : vector<8x512xf32>
    %cst = arith.constant 0.000000e+00 : f32
    %25 = vector.broadcast %cst : f32 to vector<8x512xf32>
    %26 = arith.maximumf %24, %25 : vector<8x512xf32>
    %c0_34 = arith.constant 0 : index
    %c0_35 = arith.constant 0 : index
    %27 = vector.load %arg6[%c0_34, %c0_35] : memref<72x72xf32, #tpu.memory_space<vmem>>, vector<8x72xf32>
    %c17_i32 = arith.constant 17 : i32
    %28 = tpu.dynamic_rotate %26 by %c17_i32 dim 1 : vector<8x512xf32>, i32 -> vector<8x512xf32>
    %29 = vector.broadcast %8 : vector<1x512xf32> to vector<8x512xf32>
    %30 = arith.mulf %28, %29 : vector<8x512xf32>
    %c16_i32 = arith.constant 16 : i32
    %31 = tpu.dynamic_rotate %26 by %c16_i32 dim 1 : vector<8x512xf32>, i32 -> vector<8x512xf32>
    %32 = vector.broadcast %9 : vector<1x512xf32> to vector<8x512xf32>
    %33 = arith.mulf %31, %32 : vector<8x512xf32>
    %c15_i32 = arith.constant 15 : i32
    %34 = tpu.dynamic_rotate %26 by %c15_i32 dim 1 : vector<8x512xf32>, i32 -> vector<8x512xf32>
    %35 = vector.broadcast %10 : vector<1x512xf32> to vector<8x512xf32>
    %36 = arith.mulf %34, %35 : vector<8x512xf32>
    %c1_i32 = arith.constant 1 : i32
    %37 = tpu.dynamic_rotate %26 by %c1_i32 dim 1 : vector<8x512xf32>, i32 -> vector<8x512xf32>
    %38 = vector.broadcast %11 : vector<1x512xf32> to vector<8x512xf32>
    %39 = arith.mulf %37, %38 : vector<8x512xf32>
    %c511_i32 = arith.constant 511 : i32
    %40 = tpu.dynamic_rotate %26 by %c511_i32 dim 1 : vector<8x512xf32>, i32 -> vector<8x512xf32>
    %41 = vector.broadcast %12 : vector<1x512xf32> to vector<8x512xf32>
    %42 = arith.mulf %40, %41 : vector<8x512xf32>
    %c497_i32 = arith.constant 497 : i32
    %43 = tpu.dynamic_rotate %26 by %c497_i32 dim 1 : vector<8x512xf32>, i32 -> vector<8x512xf32>
    %44 = vector.broadcast %13 : vector<1x512xf32> to vector<8x512xf32>
    %45 = arith.mulf %43, %44 : vector<8x512xf32>
    %c496_i32 = arith.constant 496 : i32
    %46 = tpu.dynamic_rotate %26 by %c496_i32 dim 1 : vector<8x512xf32>, i32 -> vector<8x512xf32>
    %47 = vector.broadcast %14 : vector<1x512xf32> to vector<8x512xf32>
    %48 = arith.mulf %46, %47 : vector<8x512xf32>
    %c495_i32 = arith.constant 495 : i32
    %49 = tpu.dynamic_rotate %26 by %c495_i32 dim 1 : vector<8x512xf32>, i32 -> vector<8x512xf32>
    %50 = vector.broadcast %15 : vector<1x512xf32> to vector<8x512xf32>
    %51 = arith.mulf %49, %50 : vector<8x512xf32>
    %52 = tpu.concatenate %30, %33, %36, %39, %26, %42, %45, %48, %51 in 0 : vector<8x512xf32>, vector<8x512xf32>, vector<8x512xf32>, vector<8x512xf32>, vector<8x512xf32>, vector<8x512xf32>, vector<8x512xf32>, vector<8x512xf32>, vector<8x512xf32> -> vector<72x512xf32>
    %cst_36 = arith.constant dense<0.000000e+00> : vector<8x512xf32>
    %53 = tpu.matmul %27, %52, %cst_36 {dimension_numbers = #tpu.dot_dimension_numbers<[1], [0], [0], [1], [0, 0, 1, 1], [], []>} : vector<8x72xf32>, vector<72x512xf32>, vector<8x512xf32> -> vector<8x512xf32>
    %54 = tpu.concatenate %53, %26 in 0 : vector<8x512xf32>, vector<8x512xf32> -> vector<16x512xf32>
    %c0_37 = arith.constant 0 : index
    %c0_38 = arith.constant 0 : index
    %55 = vector.load %arg2[%c0_37, %c0_38] : memref<512x128xf32, #tpu.memory_space<vmem>>, vector<512x128xf32>
    %cst_39 = arith.constant dense<0.000000e+00> : vector<16x128xf32>
    %56 = tpu.matmul %54, %55, %cst_39 {dimension_numbers = #tpu.dot_dimension_numbers<[1], [0], [0], [1], [0, 0, 1, 1], [], []>} : vector<16x512xf32>, vector<512x128xf32>, vector<16x128xf32> -> vector<16x128xf32>
    %57 = vector.extract_strided_slice %56 {offsets = [0, 0], sizes = [8, 128], strides = [1, 1]} : vector<16x128xf32> to vector<8x128xf32>
    %58 = vector.extract_strided_slice %56 {offsets = [8, 0], sizes = [8, 128], strides = [1, 1]} : vector<16x128xf32> to vector<8x128xf32>
    %59 = vector.broadcast %19 : vector<8x1xf32> to vector<8x128xf32>
    %60 = arith.mulf %57, %59 : vector<8x128xf32>
    %61 = vector.broadcast %20 : vector<8x1xf32> to vector<8x128xf32>
    %62 = arith.addf %60, %61 : vector<8x128xf32>
    %cst_40 = arith.constant 0.000000e+00 : f32
    %63 = vector.broadcast %cst_40 : f32 to vector<8x128xf32>
    %64 = arith.maximumf %62, %63 : vector<8x128xf32>
    %c8_41 = arith.constant 8 : index
    %c0_42 = arith.constant 0 : index
    %65 = vector.load %arg6[%c8_41, %c0_42] : memref<72x72xf32, #tpu.memory_space<vmem>>, vector<8x72xf32>
    %c9_i32 = arith.constant 9 : i32
    %66 = tpu.dynamic_rotate %64 by %c9_i32 dim 1 : vector<8x128xf32>, i32 -> vector<8x128xf32>
    %67 = vector.broadcast %0 : vector<1x128xf32> to vector<8x128xf32>
    %68 = arith.mulf %66, %67 : vector<8x128xf32>
    %c8_i32 = arith.constant 8 : i32
    %69 = tpu.dynamic_rotate %64 by %c8_i32 dim 1 : vector<8x128xf32>, i32 -> vector<8x128xf32>
    %70 = vector.broadcast %1 : vector<1x128xf32> to vector<8x128xf32>
    %71 = arith.mulf %69, %70 : vector<8x128xf32>
    %c7_i32 = arith.constant 7 : i32
    %72 = tpu.dynamic_rotate %64 by %c7_i32 dim 1 : vector<8x128xf32>, i32 -> vector<8x128xf32>
    %73 = vector.broadcast %2 : vector<1x128xf32> to vector<8x128xf32>
    %74 = arith.mulf %72, %73 : vector<8x128xf32>
    %c1_i32_43 = arith.constant 1 : i32
    %75 = tpu.dynamic_rotate %64 by %c1_i32_43 dim 1 : vector<8x128xf32>, i32 -> vector<8x128xf32>
    %76 = vector.broadcast %3 : vector<1x128xf32> to vector<8x128xf32>
    %77 = arith.mulf %75, %76 : vector<8x128xf32>
    %c127_i32 = arith.constant 127 : i32
    %78 = tpu.dynamic_rotate %64 by %c127_i32 dim 1 : vector<8x128xf32>, i32 -> vector<8x128xf32>
    %79 = vector.broadcast %4 : vector<1x128xf32> to vector<8x128xf32>
    %80 = arith.mulf %78, %79 : vector<8x128xf32>
    %c121_i32 = arith.constant 121 : i32
    %81 = tpu.dynamic_rotate %64 by %c121_i32 dim 1 : vector<8x128xf32>, i32 -> vector<8x128xf32>
    %82 = vector.broadcast %5 : vector<1x128xf32> to vector<8x128xf32>
    %83 = arith.mulf %81, %82 : vector<8x128xf32>
    %c120_i32 = arith.constant 120 : i32
    %84 = tpu.dynamic_rotate %64 by %c120_i32 dim 1 : vector<8x128xf32>, i32 -> vector<8x128xf32>
    %85 = vector.broadcast %6 : vector<1x128xf32> to vector<8x128xf32>
    %86 = arith.mulf %84, %85 : vector<8x128xf32>
    %c119_i32 = arith.constant 119 : i32
    %87 = tpu.dynamic_rotate %64 by %c119_i32 dim 1 : vector<8x128xf32>, i32 -> vector<8x128xf32>
    %88 = vector.broadcast %7 : vector<1x128xf32> to vector<8x128xf32>
    %89 = arith.mulf %87, %88 : vector<8x128xf32>
    %90 = tpu.concatenate %68, %71, %74, %77, %64, %80, %83, %86, %89 in 0 : vector<8x128xf32>, vector<8x128xf32>, vector<8x128xf32>, vector<8x128xf32>, vector<8x128xf32>, vector<8x128xf32>, vector<8x128xf32>, vector<8x128xf32>, vector<8x128xf32> -> vector<72x128xf32>
    %cst_44 = arith.constant dense<0.000000e+00> : vector<8x128xf32>
    %91 = tpu.matmul %65, %90, %cst_44 {dimension_numbers = #tpu.dot_dimension_numbers<[1], [0], [0], [1], [0, 0, 1, 1], [], []>} : vector<8x72xf32>, vector<72x128xf32>, vector<8x128xf32> -> vector<8x128xf32>
    %c64 = arith.constant 64 : index
    %c0_45 = arith.constant 0 : index
    %92 = vector.load %arg6[%c64, %c0_45] : memref<72x72xf32, #tpu.memory_space<vmem>>, vector<8x8xf32>
    %cst_46 = arith.constant dense<0.000000e+00> : vector<8x128xf32>
    %93 = tpu.matmul %92, %58, %cst_46 {dimension_numbers = #tpu.dot_dimension_numbers<[1], [0], [0], [1], [0, 0, 1, 1], [], []>} : vector<8x8xf32>, vector<8x128xf32>, vector<8x128xf32> -> vector<8x128xf32>
    %94 = arith.addf %93, %91 : vector<8x128xf32>
    %c0_47 = arith.constant 0 : index
    %c4 = arith.constant 4 : index
    %95 = vector.load %arg5[%c0_47, %c4] : memref<8x16xf32, #tpu.memory_space<vmem>>, vector<8x1xf32>
    %c0_48 = arith.constant 0 : index
    %c5_49 = arith.constant 5 : index
    %96 = vector.load %arg5[%c0_48, %c5_49] : memref<8x16xf32, #tpu.memory_space<vmem>>, vector<8x1xf32>
    %c0_50 = arith.constant 0 : index
    %c6_51 = arith.constant 6 : index
    %97 = vector.load %arg5[%c0_50, %c6_51] : memref<8x16xf32, #tpu.memory_space<vmem>>, vector<8x1xf32>
    %c0_52 = arith.constant 0 : index
    %c7_53 = arith.constant 7 : index
    %98 = vector.load %arg5[%c0_52, %c7_53] : memref<8x16xf32, #tpu.memory_space<vmem>>, vector<8x1xf32>
    %99 = vector.broadcast %95 : vector<8x1xf32> to vector<8x128xf32>
    %100 = arith.mulf %94, %99 : vector<8x128xf32>
    %101 = vector.broadcast %96 : vector<8x1xf32> to vector<8x128xf32>
    %102 = arith.addf %100, %101 : vector<8x128xf32>
    %cst_54 = arith.constant 0.000000e+00 : f32
    %103 = vector.broadcast %cst_54 : f32 to vector<8x128xf32>
    %104 = arith.maximumf %102, %103 : vector<8x128xf32>
    %c16 = arith.constant 16 : index
    %c0_55 = arith.constant 0 : index
    %105 = vector.load %arg6[%c16, %c0_55] : memref<72x72xf32, #tpu.memory_space<vmem>>, vector<8x72xf32>
    %c9_i32_56 = arith.constant 9 : i32
    %106 = tpu.dynamic_rotate %104 by %c9_i32_56 dim 1 : vector<8x128xf32>, i32 -> vector<8x128xf32>
    %107 = vector.broadcast %0 : vector<1x128xf32> to vector<8x128xf32>
    %108 = arith.mulf %106, %107 : vector<8x128xf32>
    %c8_i32_57 = arith.constant 8 : i32
    %109 = tpu.dynamic_rotate %104 by %c8_i32_57 dim 1 : vector<8x128xf32>, i32 -> vector<8x128xf32>
    %110 = vector.broadcast %1 : vector<1x128xf32> to vector<8x128xf32>
    %111 = arith.mulf %109, %110 : vector<8x128xf32>
    %c7_i32_58 = arith.constant 7 : i32
    %112 = tpu.dynamic_rotate %104 by %c7_i32_58 dim 1 : vector<8x128xf32>, i32 -> vector<8x128xf32>
    %113 = vector.broadcast %2 : vector<1x128xf32> to vector<8x128xf32>
    %114 = arith.mulf %112, %113 : vector<8x128xf32>
    %c1_i32_59 = arith.constant 1 : i32
    %115 = tpu.dynamic_rotate %104 by %c1_i32_59 dim 1 : vector<8x128xf32>, i32 -> vector<8x128xf32>
    %116 = vector.broadcast %3 : vector<1x128xf32> to vector<8x128xf32>
    %117 = arith.mulf %115, %116 : vector<8x128xf32>
    %c127_i32_60 = arith.constant 127 : i32
    %118 = tpu.dynamic_rotate %104 by %c127_i32_60 dim 1 : vector<8x128xf32>, i32 -> vector<8x128xf32>
    %119 = vector.broadcast %4 : vector<1x128xf32> to vector<8x128xf32>
    %120 = arith.mulf %118, %119 : vector<8x128xf32>
    %c121_i32_61 = arith.constant 121 : i32
    %121 = tpu.dynamic_rotate %104 by %c121_i32_61 dim 1 : vector<8x128xf32>, i32 -> vector<8x128xf32>
    %122 = vector.broadcast %5 : vector<1x128xf32> to vector<8x128xf32>
    %123 = arith.mulf %121, %122 : vector<8x128xf32>
    %c120_i32_62 = arith.constant 120 : i32
    %124 = tpu.dynamic_rotate %104 by %c120_i32_62 dim 1 : vector<8x128xf32>, i32 -> vector<8x128xf32>
    %125 = vector.broadcast %6 : vector<1x128xf32> to vector<8x128xf32>
    %126 = arith.mulf %124, %125 : vector<8x128xf32>
    %c119_i32_63 = arith.constant 119 : i32
    %127 = tpu.dynamic_rotate %104 by %c119_i32_63 dim 1 : vector<8x128xf32>, i32 -> vector<8x128xf32>
    %128 = vector.broadcast %7 : vector<1x128xf32> to vector<8x128xf32>
    %129 = arith.mulf %127, %128 : vector<8x128xf32>
    %130 = tpu.concatenate %108, %111, %114, %117, %104, %120, %123, %126, %129 in 0 : vector<8x128xf32>, vector<8x128xf32>, vector<8x128xf32>, vector<8x128xf32>, vector<8x128xf32>, vector<8x128xf32>, vector<8x128xf32>, vector<8x128xf32>, vector<8x128xf32> -> vector<72x128xf32>
    %cst_64 = arith.constant dense<0.000000e+00> : vector<8x128xf32>
    %131 = tpu.matmul %105, %130, %cst_64 {dimension_numbers = #tpu.dot_dimension_numbers<[1], [0], [0], [1], [0, 0, 1, 1], [], []>} : vector<8x72xf32>, vector<72x128xf32>, vector<8x128xf32> -> vector<8x128xf32>
    %132 = vector.broadcast %97 : vector<8x1xf32> to vector<8x128xf32>
    %133 = arith.mulf %131, %132 : vector<8x128xf32>
    %134 = vector.broadcast %98 : vector<8x1xf32> to vector<8x128xf32>
    %135 = arith.addf %133, %134 : vector<8x128xf32>
    %cst_65 = arith.constant 0.000000e+00 : f32
    %136 = vector.broadcast %cst_65 : f32 to vector<8x128xf32>
    %137 = arith.maximumf %135, %136 : vector<8x128xf32>
    %c24 = arith.constant 24 : index
    %c0_66 = arith.constant 0 : index
    %138 = vector.load %arg6[%c24, %c0_66] : memref<72x72xf32, #tpu.memory_space<vmem>>, vector<8x72xf32>
    %c9_i32_67 = arith.constant 9 : i32
    %139 = tpu.dynamic_rotate %137 by %c9_i32_67 dim 1 : vector<8x128xf32>, i32 -> vector<8x128xf32>
    %140 = vector.broadcast %0 : vector<1x128xf32> to vector<8x128xf32>
    %141 = arith.mulf %139, %140 : vector<8x128xf32>
    %c8_i32_68 = arith.constant 8 : i32
    %142 = tpu.dynamic_rotate %137 by %c8_i32_68 dim 1 : vector<8x128xf32>, i32 -> vector<8x128xf32>
    %143 = vector.broadcast %1 : vector<1x128xf32> to vector<8x128xf32>
    %144 = arith.mulf %142, %143 : vector<8x128xf32>
    %c7_i32_69 = arith.constant 7 : i32
    %145 = tpu.dynamic_rotate %137 by %c7_i32_69 dim 1 : vector<8x128xf32>, i32 -> vector<8x128xf32>
    %146 = vector.broadcast %2 : vector<1x128xf32> to vector<8x128xf32>
    %147 = arith.mulf %145, %146 : vector<8x128xf32>
    %c1_i32_70 = arith.constant 1 : i32
    %148 = tpu.dynamic_rotate %137 by %c1_i32_70 dim 1 : vector<8x128xf32>, i32 -> vector<8x128xf32>
    %149 = vector.broadcast %3 : vector<1x128xf32> to vector<8x128xf32>
    %150 = arith.mulf %148, %149 : vector<8x128xf32>
    %c127_i32_71 = arith.constant 127 : i32
    %151 = tpu.dynamic_rotate %137 by %c127_i32_71 dim 1 : vector<8x128xf32>, i32 -> vector<8x128xf32>
    %152 = vector.broadcast %4 : vector<1x128xf32> to vector<8x128xf32>
    %153 = arith.mulf %151, %152 : vector<8x128xf32>
    %c121_i32_72 = arith.constant 121 : i32
    %154 = tpu.dynamic_rotate %137 by %c121_i32_72 dim 1 : vector<8x128xf32>, i32 -> vector<8x128xf32>
    %155 = vector.broadcast %5 : vector<1x128xf32> to vector<8x128xf32>
    %156 = arith.mulf %154, %155 : vector<8x128xf32>
    %c120_i32_73 = arith.constant 120 : i32
    %157 = tpu.dynamic_rotate %137 by %c120_i32_73 dim 1 : vector<8x128xf32>, i32 -> vector<8x128xf32>
    %158 = vector.broadcast %6 : vector<1x128xf32> to vector<8x128xf32>
    %159 = arith.mulf %157, %158 : vector<8x128xf32>
    %c119_i32_74 = arith.constant 119 : i32
    %160 = tpu.dynamic_rotate %137 by %c119_i32_74 dim 1 : vector<8x128xf32>, i32 -> vector<8x128xf32>
    %161 = vector.broadcast %7 : vector<1x128xf32> to vector<8x128xf32>
    %162 = arith.mulf %160, %161 : vector<8x128xf32>
    %163 = tpu.concatenate %141, %144, %147, %150, %137, %153, %156, %159, %162 in 0 : vector<8x128xf32>, vector<8x128xf32>, vector<8x128xf32>, vector<8x128xf32>, vector<8x128xf32>, vector<8x128xf32>, vector<8x128xf32>, vector<8x128xf32>, vector<8x128xf32> -> vector<72x128xf32>
    %cst_75 = arith.constant dense<0.000000e+00> : vector<8x128xf32>
    %164 = tpu.matmul %138, %163, %cst_75 {dimension_numbers = #tpu.dot_dimension_numbers<[1], [0], [0], [1], [0, 0, 1, 1], [], []>} : vector<8x72xf32>, vector<72x128xf32>, vector<8x128xf32> -> vector<8x128xf32>
    %165 = arith.addf %94, %164 : vector<8x128xf32>
    %c0_76 = arith.constant 0 : index
    %c8_77 = arith.constant 8 : index
    %166 = vector.load %arg5[%c0_76, %c8_77] : memref<8x16xf32, #tpu.memory_space<vmem>>, vector<8x1xf32>
    %c0_78 = arith.constant 0 : index
    %c9 = arith.constant 9 : index
    %167 = vector.load %arg5[%c0_78, %c9] : memref<8x16xf32, #tpu.memory_space<vmem>>, vector<8x1xf32>
    %c0_79 = arith.constant 0 : index
    %c10 = arith.constant 10 : index
    %168 = vector.load %arg5[%c0_79, %c10] : memref<8x16xf32, #tpu.memory_space<vmem>>, vector<8x1xf32>
    %c0_80 = arith.constant 0 : index
    %c11 = arith.constant 11 : index
    %169 = vector.load %arg5[%c0_80, %c11] : memref<8x16xf32, #tpu.memory_space<vmem>>, vector<8x1xf32>
    %170 = vector.broadcast %166 : vector<8x1xf32> to vector<8x128xf32>
    %171 = arith.mulf %165, %170 : vector<8x128xf32>
    %172 = vector.broadcast %167 : vector<8x1xf32> to vector<8x128xf32>
    %173 = arith.addf %171, %172 : vector<8x128xf32>
    %cst_81 = arith.constant 0.000000e+00 : f32
    %174 = vector.broadcast %cst_81 : f32 to vector<8x128xf32>
    %175 = arith.maximumf %173, %174 : vector<8x128xf32>
    %c32 = arith.constant 32 : index
    %c0_82 = arith.constant 0 : index
    %176 = vector.load %arg6[%c32, %c0_82] : memref<72x72xf32, #tpu.memory_space<vmem>>, vector<8x72xf32>
    %c9_i32_83 = arith.constant 9 : i32
    %177 = tpu.dynamic_rotate %175 by %c9_i32_83 dim 1 : vector<8x128xf32>, i32 -> vector<8x128xf32>
    %178 = vector.broadcast %0 : vector<1x128xf32> to vector<8x128xf32>
    %179 = arith.mulf %177, %178 : vector<8x128xf32>
    %c8_i32_84 = arith.constant 8 : i32
    %180 = tpu.dynamic_rotate %175 by %c8_i32_84 dim 1 : vector<8x128xf32>, i32 -> vector<8x128xf32>
    %181 = vector.broadcast %1 : vector<1x128xf32> to vector<8x128xf32>
    %182 = arith.mulf %180, %181 : vector<8x128xf32>
    %c7_i32_85 = arith.constant 7 : i32
    %183 = tpu.dynamic_rotate %175 by %c7_i32_85 dim 1 : vector<8x128xf32>, i32 -> vector<8x128xf32>
    %184 = vector.broadcast %2 : vector<1x128xf32> to vector<8x128xf32>
    %185 = arith.mulf %183, %184 : vector<8x128xf32>
    %c1_i32_86 = arith.constant 1 : i32
    %186 = tpu.dynamic_rotate %175 by %c1_i32_86 dim 1 : vector<8x128xf32>, i32 -> vector<8x128xf32>
    %187 = vector.broadcast %3 : vector<1x128xf32> to vector<8x128xf32>
    %188 = arith.mulf %186, %187 : vector<8x128xf32>
    %c127_i32_87 = arith.constant 127 : i32
    %189 = tpu.dynamic_rotate %175 by %c127_i32_87 dim 1 : vector<8x128xf32>, i32 -> vector<8x128xf32>
    %190 = vector.broadcast %4 : vector<1x128xf32> to vector<8x128xf32>
    %191 = arith.mulf %189, %190 : vector<8x128xf32>
    %c121_i32_88 = arith.constant 121 : i32
    %192 = tpu.dynamic_rotate %175 by %c121_i32_88 dim 1 : vector<8x128xf32>, i32 -> vector<8x128xf32>
    %193 = vector.broadcast %5 : vector<1x128xf32> to vector<8x128xf32>
    %194 = arith.mulf %192, %193 : vector<8x128xf32>
    %c120_i32_89 = arith.constant 120 : i32
    %195 = tpu.dynamic_rotate %175 by %c120_i32_89 dim 1 : vector<8x128xf32>, i32 -> vector<8x128xf32>
    %196 = vector.broadcast %6 : vector<1x128xf32> to vector<8x128xf32>
    %197 = arith.mulf %195, %196 : vector<8x128xf32>
    %c119_i32_90 = arith.constant 119 : i32
    %198 = tpu.dynamic_rotate %175 by %c119_i32_90 dim 1 : vector<8x128xf32>, i32 -> vector<8x128xf32>
    %199 = vector.broadcast %7 : vector<1x128xf32> to vector<8x128xf32>
    %200 = arith.mulf %198, %199 : vector<8x128xf32>
    %201 = tpu.concatenate %179, %182, %185, %188, %175, %191, %194, %197, %200 in 0 : vector<8x128xf32>, vector<8x128xf32>, vector<8x128xf32>, vector<8x128xf32>, vector<8x128xf32>, vector<8x128xf32>, vector<8x128xf32>, vector<8x128xf32>, vector<8x128xf32> -> vector<72x128xf32>
    %cst_91 = arith.constant dense<0.000000e+00> : vector<8x128xf32>
    %202 = tpu.matmul %176, %201, %cst_91 {dimension_numbers = #tpu.dot_dimension_numbers<[1], [0], [0], [1], [0, 0, 1, 1], [], []>} : vector<8x72xf32>, vector<72x128xf32>, vector<8x128xf32> -> vector<8x128xf32>
    %203 = vector.broadcast %168 : vector<8x1xf32> to vector<8x128xf32>
    %204 = arith.mulf %202, %203 : vector<8x128xf32>
    %205 = vector.broadcast %169 : vector<8x1xf32> to vector<8x128xf32>
    %206 = arith.addf %204, %205 : vector<8x128xf32>
    %cst_92 = arith.constant 0.000000e+00 : f32
    %207 = vector.broadcast %cst_92 : f32 to vector<8x128xf32>
    %208 = arith.maximumf %206, %207 : vector<8x128xf32>
    %c40 = arith.constant 40 : index
    %c0_93 = arith.constant 0 : index
    %209 = vector.load %arg6[%c40, %c0_93] : memref<72x72xf32, #tpu.memory_space<vmem>>, vector<8x72xf32>
    %c9_i32_94 = arith.constant 9 : i32
    %210 = tpu.dynamic_rotate %208 by %c9_i32_94 dim 1 : vector<8x128xf32>, i32 -> vector<8x128xf32>
    %211 = vector.broadcast %0 : vector<1x128xf32> to vector<8x128xf32>
    %212 = arith.mulf %210, %211 : vector<8x128xf32>
    %c8_i32_95 = arith.constant 8 : i32
    %213 = tpu.dynamic_rotate %208 by %c8_i32_95 dim 1 : vector<8x128xf32>, i32 -> vector<8x128xf32>
    %214 = vector.broadcast %1 : vector<1x128xf32> to vector<8x128xf32>
    %215 = arith.mulf %213, %214 : vector<8x128xf32>
    %c7_i32_96 = arith.constant 7 : i32
    %216 = tpu.dynamic_rotate %208 by %c7_i32_96 dim 1 : vector<8x128xf32>, i32 -> vector<8x128xf32>
    %217 = vector.broadcast %2 : vector<1x128xf32> to vector<8x128xf32>
    %218 = arith.mulf %216, %217 : vector<8x128xf32>
    %c1_i32_97 = arith.constant 1 : i32
    %219 = tpu.dynamic_rotate %208 by %c1_i32_97 dim 1 : vector<8x128xf32>, i32 -> vector<8x128xf32>
    %220 = vector.broadcast %3 : vector<1x128xf32> to vector<8x128xf32>
    %221 = arith.mulf %219, %220 : vector<8x128xf32>
    %c127_i32_98 = arith.constant 127 : i32
    %222 = tpu.dynamic_rotate %208 by %c127_i32_98 dim 1 : vector<8x128xf32>, i32 -> vector<8x128xf32>
    %223 = vector.broadcast %4 : vector<1x128xf32> to vector<8x128xf32>
    %224 = arith.mulf %222, %223 : vector<8x128xf32>
    %c121_i32_99 = arith.constant 121 : i32
    %225 = tpu.dynamic_rotate %208 by %c121_i32_99 dim 1 : vector<8x128xf32>, i32 -> vector<8x128xf32>
    %226 = vector.broadcast %5 : vector<1x128xf32> to vector<8x128xf32>
    %227 = arith.mulf %225, %226 : vector<8x128xf32>
    %c120_i32_100 = arith.constant 120 : i32
    %228 = tpu.dynamic_rotate %208 by %c120_i32_100 dim 1 : vector<8x128xf32>, i32 -> vector<8x128xf32>
    %229 = vector.broadcast %6 : vector<1x128xf32> to vector<8x128xf32>
    %230 = arith.mulf %228, %229 : vector<8x128xf32>
    %c119_i32_101 = arith.constant 119 : i32
    %231 = tpu.dynamic_rotate %208 by %c119_i32_101 dim 1 : vector<8x128xf32>, i32 -> vector<8x128xf32>
    %232 = vector.broadcast %7 : vector<1x128xf32> to vector<8x128xf32>
    %233 = arith.mulf %231, %232 : vector<8x128xf32>
    %234 = tpu.concatenate %212, %215, %218, %221, %208, %224, %227, %230, %233 in 0 : vector<8x128xf32>, vector<8x128xf32>, vector<8x128xf32>, vector<8x128xf32>, vector<8x128xf32>, vector<8x128xf32>, vector<8x128xf32>, vector<8x128xf32>, vector<8x128xf32> -> vector<72x128xf32>
    %cst_102 = arith.constant dense<0.000000e+00> : vector<8x128xf32>
    %235 = tpu.matmul %209, %234, %cst_102 {dimension_numbers = #tpu.dot_dimension_numbers<[1], [0], [0], [1], [0, 0, 1, 1], [], []>} : vector<8x72xf32>, vector<72x128xf32>, vector<8x128xf32> -> vector<8x128xf32>
    %236 = arith.addf %165, %235 : vector<8x128xf32>
    %c0_103 = arith.constant 0 : index
    %c12 = arith.constant 12 : index
    %237 = vector.load %arg5[%c0_103, %c12] : memref<8x16xf32, #tpu.memory_space<vmem>>, vector<8x1xf32>
    %c0_104 = arith.constant 0 : index
    %c13 = arith.constant 13 : index
    %238 = vector.load %arg5[%c0_104, %c13] : memref<8x16xf32, #tpu.memory_space<vmem>>, vector<8x1xf32>
    %c0_105 = arith.constant 0 : index
    %c14 = arith.constant 14 : index
    %239 = vector.load %arg5[%c0_105, %c14] : memref<8x16xf32, #tpu.memory_space<vmem>>, vector<8x1xf32>
    %c0_106 = arith.constant 0 : index
    %c15 = arith.constant 15 : index
    %240 = vector.load %arg5[%c0_106, %c15] : memref<8x16xf32, #tpu.memory_space<vmem>>, vector<8x1xf32>
    %241 = vector.broadcast %237 : vector<8x1xf32> to vector<8x128xf32>
    %242 = arith.mulf %236, %241 : vector<8x128xf32>
    %243 = vector.broadcast %238 : vector<8x1xf32> to vector<8x128xf32>
    %244 = arith.addf %242, %243 : vector<8x128xf32>
    %cst_107 = arith.constant 0.000000e+00 : f32
    %245 = vector.broadcast %cst_107 : f32 to vector<8x128xf32>
    %246 = arith.maximumf %244, %245 : vector<8x128xf32>
    %c48 = arith.constant 48 : index
    %c0_108 = arith.constant 0 : index
    %247 = vector.load %arg6[%c48, %c0_108] : memref<72x72xf32, #tpu.memory_space<vmem>>, vector<8x72xf32>
    %c9_i32_109 = arith.constant 9 : i32
    %248 = tpu.dynamic_rotate %246 by %c9_i32_109 dim 1 : vector<8x128xf32>, i32 -> vector<8x128xf32>
    %249 = vector.broadcast %0 : vector<1x128xf32> to vector<8x128xf32>
    %250 = arith.mulf %248, %249 : vector<8x128xf32>
    %c8_i32_110 = arith.constant 8 : i32
    %251 = tpu.dynamic_rotate %246 by %c8_i32_110 dim 1 : vector<8x128xf32>, i32 -> vector<8x128xf32>
    %252 = vector.broadcast %1 : vector<1x128xf32> to vector<8x128xf32>
    %253 = arith.mulf %251, %252 : vector<8x128xf32>
    %c7_i32_111 = arith.constant 7 : i32
    %254 = tpu.dynamic_rotate %246 by %c7_i32_111 dim 1 : vector<8x128xf32>, i32 -> vector<8x128xf32>
    %255 = vector.broadcast %2 : vector<1x128xf32> to vector<8x128xf32>
    %256 = arith.mulf %254, %255 : vector<8x128xf32>
    %c1_i32_112 = arith.constant 1 : i32
    %257 = tpu.dynamic_rotate %246 by %c1_i32_112 dim 1 : vector<8x128xf32>, i32 -> vector<8x128xf32>
    %258 = vector.broadcast %3 : vector<1x128xf32> to vector<8x128xf32>
    %259 = arith.mulf %257, %258 : vector<8x128xf32>
    %c127_i32_113 = arith.constant 127 : i32
    %260 = tpu.dynamic_rotate %246 by %c127_i32_113 dim 1 : vector<8x128xf32>, i32 -> vector<8x128xf32>
    %261 = vector.broadcast %4 : vector<1x128xf32> to vector<8x128xf32>
    %262 = arith.mulf %260, %261 : vector<8x128xf32>
    %c121_i32_114 = arith.constant 121 : i32
    %263 = tpu.dynamic_rotate %246 by %c121_i32_114 dim 1 : vector<8x128xf32>, i32 -> vector<8x128xf32>
    %264 = vector.broadcast %5 : vector<1x128xf32> to vector<8x128xf32>
    %265 = arith.mulf %263, %264 : vector<8x128xf32>
    %c120_i32_115 = arith.constant 120 : i32
    %266 = tpu.dynamic_rotate %246 by %c120_i32_115 dim 1 : vector<8x128xf32>, i32 -> vector<8x128xf32>
    %267 = vector.broadcast %6 : vector<1x128xf32> to vector<8x128xf32>
    %268 = arith.mulf %266, %267 : vector<8x128xf32>
    %c119_i32_116 = arith.constant 119 : i32
    %269 = tpu.dynamic_rotate %246 by %c119_i32_116 dim 1 : vector<8x128xf32>, i32 -> vector<8x128xf32>
    %270 = vector.broadcast %7 : vector<1x128xf32> to vector<8x128xf32>
    %271 = arith.mulf %269, %270 : vector<8x128xf32>
    %272 = tpu.concatenate %250, %253, %256, %259, %246, %262, %265, %268, %271 in 0 : vector<8x128xf32>, vector<8x128xf32>, vector<8x128xf32>, vector<8x128xf32>, vector<8x128xf32>, vector<8x128xf32>, vector<8x128xf32>, vector<8x128xf32>, vector<8x128xf32> -> vector<72x128xf32>
    %cst_117 = arith.constant dense<0.000000e+00> : vector<8x128xf32>
    %273 = tpu.matmul %247, %272, %cst_117 {dimension_numbers = #tpu.dot_dimension_numbers<[1], [0], [0], [1], [0, 0, 1, 1], [], []>} : vector<8x72xf32>, vector<72x128xf32>, vector<8x128xf32> -> vector<8x128xf32>
    %274 = vector.broadcast %239 : vector<8x1xf32> to vector<8x128xf32>
    %275 = arith.mulf %273, %274 : vector<8x128xf32>
    %276 = vector.broadcast %240 : vector<8x1xf32> to vector<8x128xf32>
    %277 = arith.addf %275, %276 : vector<8x128xf32>
    %cst_118 = arith.constant 0.000000e+00 : f32
    %278 = vector.broadcast %cst_118 : f32 to vector<8x128xf32>
    %279 = arith.maximumf %277, %278 : vector<8x128xf32>
    %c56 = arith.constant 56 : index
    %c0_119 = arith.constant 0 : index
    %280 = vector.load %arg6[%c56, %c0_119] : memref<72x72xf32, #tpu.memory_space<vmem>>, vector<8x72xf32>
    %c9_i32_120 = arith.constant 9 : i32
    %281 = tpu.dynamic_rotate %279 by %c9_i32_120 dim 1 : vector<8x128xf32>, i32 -> vector<8x128xf32>
    %282 = vector.broadcast %0 : vector<1x128xf32> to vector<8x128xf32>
    %283 = arith.mulf %281, %282 : vector<8x128xf32>
    %c8_i32_121 = arith.constant 8 : i32
    %284 = tpu.dynamic_rotate %279 by %c8_i32_121 dim 1 : vector<8x128xf32>, i32 -> vector<8x128xf32>
    %285 = vector.broadcast %1 : vector<1x128xf32> to vector<8x128xf32>
    %286 = arith.mulf %284, %285 : vector<8x128xf32>
    %c7_i32_122 = arith.constant 7 : i32
    %287 = tpu.dynamic_rotate %279 by %c7_i32_122 dim 1 : vector<8x128xf32>, i32 -> vector<8x128xf32>
    %288 = vector.broadcast %2 : vector<1x128xf32> to vector<8x128xf32>
    %289 = arith.mulf %287, %288 : vector<8x128xf32>
    %c1_i32_123 = arith.constant 1 : i32
    %290 = tpu.dynamic_rotate %279 by %c1_i32_123 dim 1 : vector<8x128xf32>, i32 -> vector<8x128xf32>
    %291 = vector.broadcast %3 : vector<1x128xf32> to vector<8x128xf32>
    %292 = arith.mulf %290, %291 : vector<8x128xf32>
    %c127_i32_124 = arith.constant 127 : i32
    %293 = tpu.dynamic_rotate %279 by %c127_i32_124 dim 1 : vector<8x128xf32>, i32 -> vector<8x128xf32>
    %294 = vector.broadcast %4 : vector<1x128xf32> to vector<8x128xf32>
    %295 = arith.mulf %293, %294 : vector<8x128xf32>
    %c121_i32_125 = arith.constant 121 : i32
    %296 = tpu.dynamic_rotate %279 by %c121_i32_125 dim 1 : vector<8x128xf32>, i32 -> vector<8x128xf32>
    %297 = vector.broadcast %5 : vector<1x128xf32> to vector<8x128xf32>
    %298 = arith.mulf %296, %297 : vector<8x128xf32>
    %c120_i32_126 = arith.constant 120 : i32
    %299 = tpu.dynamic_rotate %279 by %c120_i32_126 dim 1 : vector<8x128xf32>, i32 -> vector<8x128xf32>
    %300 = vector.broadcast %6 : vector<1x128xf32> to vector<8x128xf32>
    %301 = arith.mulf %299, %300 : vector<8x128xf32>
    %c119_i32_127 = arith.constant 119 : i32
    %302 = tpu.dynamic_rotate %279 by %c119_i32_127 dim 1 : vector<8x128xf32>, i32 -> vector<8x128xf32>
    %303 = vector.broadcast %7 : vector<1x128xf32> to vector<8x128xf32>
    %304 = arith.mulf %302, %303 : vector<8x128xf32>
    %305 = tpu.concatenate %283, %286, %289, %292, %279, %295, %298, %301, %304 in 0 : vector<8x128xf32>, vector<8x128xf32>, vector<8x128xf32>, vector<8x128xf32>, vector<8x128xf32>, vector<8x128xf32>, vector<8x128xf32>, vector<8x128xf32>, vector<8x128xf32> -> vector<72x128xf32>
    %cst_128 = arith.constant dense<0.000000e+00> : vector<8x128xf32>
    %306 = tpu.matmul %280, %305, %cst_128 {dimension_numbers = #tpu.dot_dimension_numbers<[1], [0], [0], [1], [0, 0, 1, 1], [], []>} : vector<8x72xf32>, vector<72x128xf32>, vector<8x128xf32> -> vector<8x128xf32>
    %307 = arith.addf %236, %306 : vector<8x128xf32>
    %c0_129 = arith.constant 0 : index
    %c0_130 = arith.constant 0 : index
    %308 = vector.load %arg7[%c0_129, %c0_130] : memref<8x128xf32, #tpu.memory_space<vmem>>, vector<8x128xf32>
    tpu.vector_store %arg7[%c0_129, %c0_130], %307 {strides = array<i32>} : memref<8x128xf32, #tpu.memory_space<vmem>>, vector<8x128xf32>,
    return
  }
  func.func @transform_0(%arg0: i32) -> (i32, i32) {
    %c0_i32 = arith.constant 0 : i32
    %c0_i32_0 = arith.constant 0 : i32
    return %c0_i32, %arg0 : i32, i32
  }
  func.func @transform_1(%arg0: i32) -> (i32, i32) {
    %c0_i32 = arith.constant 0 : i32
    %c0_i32_0 = arith.constant 0 : i32
    %c0_i32_1 = arith.constant 0 : i32
    return %c0_i32, %c0_i32_0 : i32, i32
  }
  func.func @transform_2(%arg0: i32) -> (i32, i32) {
    %c0_i32 = arith.constant 0 : i32
    %c0_i32_0 = arith.constant 0 : i32
    %c0_i32_1 = arith.constant 0 : i32
    return %c0_i32, %c0_i32_0 : i32, i32
  }
  func.func @transform_3(%arg0: i32) -> (i32, i32) {
    %c0_i32 = arith.constant 0 : i32
    %c0_i32_0 = arith.constant 0 : i32
    %c0_i32_1 = arith.constant 0 : i32
    return %c0_i32, %c0_i32_0 : i32, i32
  }
  func.func @transform_4(%arg0: i32) -> (i32, i32) {
    %c0_i32 = arith.constant 0 : i32
    %c0_i32_0 = arith.constant 0 : i32
    %c0_i32_1 = arith.constant 0 : i32
    return %c0_i32, %c0_i32_0 : i32, i32
  }
  func.func @transform_5(%arg0: i32) -> (i32, i32) {
    %c0_i32 = arith.constant 0 : i32
    %c0_i32_0 = arith.constant 0 : i32
    %c0_i32_1 = arith.constant 0 : i32
    return %c0_i32, %c0_i32_0 : i32, i32
  }
  func.func @transform_6(%arg0: i32) -> (i32, i32) {
    %c0_i32 = arith.constant 0 : i32
    %c0_i32_0 = arith.constant 0 : i32
    return %c0_i32, %arg0 : i32, i32
  }
}

</mosaic_0001>

<bundles_post_ra>
// kernel: tpu_custom_call.1
= control target key start
LH: loop header
LB: loop body
LE: loop exit
PB: predicated region body
PF: predicated region fallthrough
CT: control target
= control target key end

     0   :  { %11 = vsyncpa [#allocation3], 0  ;;  %s2956_s0 = inlined_call_operand.hbm [shape: f32[8,512], index: 0, kind: input, shape index: {}]   ;;  %s2957_s1 = inlined_call_operand.hbm [shape: f32[512,128], index: 1, kind: input, shape index: {}]   ;;  %s2958_s2 = inlined_call_operand.hbm [shape: f32[9,512], index: 2, kind: input, shape index: {}]   ;;  %s2959_s3 = inlined_call_operand.hbm [shape: f32[9,128], index: 3, kind: input, shape index: {}]   ;;  %s2960_s4 = inlined_call_operand.vmem [shape: f32[8,16], index: 4, kind: input, shape index: {}]   ;;  %s2961_s5 = inlined_call_operand.hbm [shape: f32[72,72], index: 5, kind: input, shape index: {}]   ;;  %s2962_s6 = inlined_call_operand.hbm [shape: f32[8,128], index: 6, kind: output, shape index: {}]  }
   0x1   :  { %12 = vsyncpa [#allocation6], 0 }
   0x2   :  { %13 = vsyncpa [#allocation9], 0 }
   0x3   :  { %14 = vsyncpa [#allocation4], 0  ;;  %s2396_s21 = smov [#allocation5]   ;;  %s2256_s25 = scalar_lea.hbm %s2957_s1, 8192 }
   0x4   :  { %s30_s22 = sshll.u32 %s2396_s21, 4  ;;  %p2257_p0 = scmp.ne.s32.totalorder %s2957_s1, %s2256_s25  ;;  %s31_s22 = int_to_ptr.vmem [resolvable:$true] %s30_s22 }
   0x5   :  { %p2260_p1 = scmp.lt.u32.totalorder %s2256_s25, %s2957_s1 }
   0x7   :  { %p2262_p2 = pnand %p2260_p1, %p2257_p0 }
   0x9   :  { %2265 = shalt.err (!%p2262_p2)
}
   0xa   :  { %s2266_s30 = scalar_lea.vmem %s31_s22, 8192  ;;  %p2271_p4 = scmp.lt.s32.totalorder %s31_s22, %s31_s22 }
   0xb   :  { %p2267_p3 = scmp.ne.s32.totalorder %s31_s22, %s2266_s30  ;;  %p2272_p5 = scmp.lt.s32.totalorder %s2266_s30, %s2266_s30 }
   0xd   :  { %p2273_p6 = por %p2272_p5, %p2271_p4 }
   0xf   :  { %p2274_p7 = pnand %p2273_p6, %p2267_p3 }
  0x11   :  { %2277 = shalt.err (!%p2274_p7)
}
  0x12   :  { %s2397_s7 = smov 128   ;;  %s2398_s8 = smov 8  }
  0x13   :  { %36 = dma.hbm_to_vmem [thread:$0]  %s2957_s1, 8192, %s31_s22, [#allocation6], %s2397_s7, %s2397_s7, %s2398_s8  }
  0x14   :  { %s2399_s11 = smov [#allocation8]   ;;  %s2400_s13 = smov [#allocation2]  }
  0x15   :  { %s54_s12 = sshll.u32 %s2399_s11, 4  ;;  %s21_s14 = sshll.u32 %s2400_s13, 4  ;;  %s55_s12 = int_to_ptr.vmem [resolvable:$true] %s54_s12  ;;  %s22_s14 = int_to_ptr.vmem [resolvable:$true] %s21_s14 }
  0x16   :  { %s2278_s17 = scalar_lea.hbm %s2959_s3, 256 }
  0x17   :  { %p2279_p8 = scmp.ne.s32.totalorder %s2959_s3, %s2278_s17  ;;  %p2282_p9 = scmp.lt.u32.totalorder %s2278_s17, %s2959_s3 }
  0x19   :  { %p2284_p10 = pnand %p2282_p9, %p2279_p8 }
  0x1b   :  { %2287 = shalt.err (!%p2284_p10)
}
  0x1c   :  { %s2288_s1 = scalar_lea.vmem %s55_s12, 256  ;;  %p2293_p12 = scmp.lt.s32.totalorder %s55_s12, %s55_s12 }
  0x1d   :  { %p2289_p11 = scmp.ne.s32.totalorder %s55_s12, %s2288_s1  ;;  %p2294_p13 = scmp.lt.s32.totalorder %s2288_s1, %s2288_s1 }
  0x1f   :  { %p2295_p0 = por %p2294_p13, %p2293_p12 }
  0x21   :  { %p2296_p1 = pnand %p2295_p0, %p2289_p11 }
  0x23   :  { %2299 = shalt.err (!%p2296_p1)
}
  0x24   :  { %60 = dma.hbm_to_vmem [thread:$0]  %s2959_s3, 256, %s55_s12, [#allocation9], %s2397_s7, %s2397_s7, %s2398_s8  }
  0x25   :  { %s2300_s26 = scalar_lea.hbm %s2956_s0, 512 }
  0x26   :  { %p2301_p2 = scmp.ne.s32.totalorder %s2956_s0, %s2300_s26  ;;  %p2304_p3 = scmp.lt.u32.totalorder %s2300_s26, %s2956_s0 }
  0x28   :  { %p2306_p4 = pnand %p2304_p3, %p2301_p2 }
  0x2a   :  { %2309 = shalt.err (!%p2306_p4)
}
  0x2b   :  { %s2310_s9 = scalar_lea.vmem %s22_s14, 512  ;;  %p2315_p6 = scmp.lt.s32.totalorder %s22_s14, %s22_s14 }
  0x2c   :  { %p2311_p5 = scmp.ne.s32.totalorder %s22_s14, %s2310_s9  ;;  %p2316_p7 = scmp.lt.s32.totalorder %s2310_s9, %s2310_s9 }
  0x2e   :  { %p2317_p8 = por %p2316_p7, %p2315_p6 }
  0x30   :  { %p2318_p9 = pnand %p2317_p8, %p2311_p5 }
  0x32   :  { %2321 = shalt.err (!%p2318_p9)
}
  0x33   :  { %24 = dma.hbm_to_vmem [thread:$0]  %s2956_s0, 512, %s22_s14, [#allocation3]  }
  0x34   :  { %s2401_s11 = smov [#allocation7]   ;;  %s2322_s16 = scalar_lea.hbm %s2958_s2, 1024 }
  0x35   :  { %s42_s12 = sshll.u32 %s2401_s11, 4  ;;  %p2323_p10 = scmp.ne.s32.totalorder %s2958_s2, %s2322_s16  ;;  %s43_s12 = int_to_ptr.vmem [resolvable:$true] %s42_s12 }
  0x36   :  { %p2326_p11 = scmp.lt.u32.totalorder %s2322_s16, %s2958_s2 }
  0x38   :  { %p2328_p12 = pnand %p2326_p11, %p2323_p10 }
  0x3a   :  { %2331 = shalt.err (!%p2328_p12)
}
  0x3b   :  { %s2332_s21 = scalar_lea.vmem %s43_s12, 1024  ;;  %p2337_p0 = scmp.lt.s32.totalorder %s43_s12, %s43_s12 }
  0x3c   :  { %p2333_p13 = scmp.ne.s32.totalorder %s43_s12, %s2332_s21  ;;  %p2338_p1 = scmp.lt.s32.totalorder %s2332_s21, %s2332_s21 }
  0x3e   :  { %p2339_p2 = por %p2338_p1, %p2337_p0 }
  0x40   :  { %p2340_p3 = pnand %p2339_p2, %p2333_p13 }
  0x42   :  { %2343 = shalt.err (!%p2340_p3)
}
  0x43   :  { %s2402_s0 = smov 512   ;;  %s2403_s14 = smov 32  }
  0x44   :  { %48 = dma.hbm_to_vmem [thread:$0]  %s2958_s2, 1024, %s43_s12, [#allocation6], %s2402_s0, %s2402_s0, %s2403_s14  }
  0x45   :  { %s2404_s23 = smov [#allocation10]   ;;  %s2344_s27 = scalar_lea.hbm %s2961_s5, 1152 }
  0x46   :  { %s68_s24 = sshll.u32 %s2404_s23, 4  ;;  %p2345_p4 = scmp.ne.s32.totalorder %s2961_s5, %s2344_s27  ;;  %s69_s24 = int_to_ptr.vmem [resolvable:$true] %s68_s24 }
  0x47   :  { %p2348_p5 = scmp.lt.u32.totalorder %s2344_s27, %s2961_s5 }
  0x49   :  { %p2350_p6 = pnand %p2348_p5, %p2345_p4 }
  0x4b   :  { %2353 = shalt.err (!%p2350_p6)
}
  0x4c   :  { %s2354_s3 = scalar_lea.vmem %s69_s24, 1152  ;;  %p2359_p8 = scmp.lt.s32.totalorder %s69_s24, %s69_s24 }
  0x4d   :  { %p2355_p7 = scmp.ne.s32.totalorder %s69_s24, %s2354_s3  ;;  %p2360_p9 = scmp.lt.s32.totalorder %s2354_s3, %s2354_s3 }
  0x4f   :  { %p2361_p10 = por %p2360_p9, %p2359_p8 }
  0x51   :  { %p2362_p11 = pnand %p2361_p10, %p2355_p7 }
  0x53   :  { %2365 = shalt.err (!%p2362_p11)
}
  0x54   :  { %74 = dma.hbm_to_vmem [thread:$0]  %s2961_s5, 1152, %s69_s24, [#allocation9], %s2397_s7, %s2397_s7, %s2398_s8  }
  0x55   :  { %2388 = dma.done.wait [#allocation3], 512  }
  0x56   :  { %2389 = vsyncadd [#allocation3], 4294966784 }
  0x57   :  { %2390 = dma.done.wait [#allocation6], 9216  }
  0x58   :  { %2391 = vsyncadd [#allocation6], 4294958080 }
  0x59   :  { %2392 = dma.done.wait [#allocation9], 1408  }
  0x5a   :  { %2393 = vsyncadd [#allocation9], 4294965888  ;;  %v2405_v0 = vmov 0   ;;  %v2545_v1 = vld [vmem:[%s2960_s4] sm:$0xff]  ;;  %v2406_v2 = vmov 1   ;;  %v116_v5 = vld [vmem:[#allocation2 + $0x18] sm:$0xff]  ;;  %v148_v22 = vlaneseq }
  0x5b   :  { %2239 = vset.pattern.permute.xlu0 %v2405_v0  ;;  %v113_v4 = vld [vmem:[#allocation2] sm:$0xff]  ;;  %v114_v6 = vld [vmem:[#allocation2 + $0x8] sm:$0xff]  ;;  %v115_v13 = vld [vmem:[#allocation2 + $0x10] sm:$0xff]  ;;  %s2407_s5 = smov 17   ;;  %s2408_s7 = smov 16   ;;  %v2415_v21 = vmov 0.0  }
  0x5c   :  { %120 = vperm.xlu0 %2239, %v2545_v1   ;;  %s2409_s13 = smov 15   ;;  %s2410_s15 = smov 1   ;;  %585 = vmatprep.mubr.f32.mxu1 %v2415_v21  ;;  %v157_v25 = vshrl.u32 %v148_v22, 7  ;;  %v2599_v26 = vand.u32 127, %v148_v22  ;;  %vm446_vm8 = vcmask 588800   ;;  %vm2422_vm9 = vmmov 0  }
  0x5d   :  { %s2411_s16 = smov 127   ;;  %s2412_s17 = smov 113   ;;  %514 = vmatprep.mubr.f32.mxu0 %v2415_v21  ;;  %v98_v30 = vld [vmem:[#allocation7] ss:$8 sm:$0xf]  ;;  %vm948_vm10 = vcmask 64512  }
  0x5e   :  { %s2413_s18 = smov 112   ;;  %s2414_s19 = smov 111   ;;  %v2601_v29 = vsub.s32 0, %v157_v25  ;;  %v2603_v31 = vsub.s32 1, %v157_v25  ;;  %vm150_vm0 = vcmp.lt.s32.totalorder %v2599_v26, 17  ;;  %v2606_v35 = vsub.s32 3, %v157_v25 }
  0x5f   :  { %v100_v32 = vld [vmem:[#allocation7 + $0x1] ss:$8 sm:$0xf]  ;;  %v2608_v36 = vsub.s32 2, %v157_v25  ;;  %vm188_vm1 = vcmp.lt.s32.totalorder %v2599_v26, 16  ;;  %vm226_vm2 = vcmp.lt.s32.totalorder %v2599_v26, 15 }
  0x60   :  { %2240 = vset.pattern.permute.xlu0 %v2406_v2  ;;  %v159_v37 = vrot.slane %v98_v30, %v2601_v29  ;;  %v163_v38 = vrot.slane %v98_v30, %v2603_v31  ;;  %v201_v39 = vrot.slane %v100_v32, %v2603_v31  ;;  %v197_v40 = vrot.slane %v100_v32, %v2601_v29  ;;  %s2419_s20 = smov 7   ;;  %s2420_s21 = smov 9  }
  0x61   :  { %128 = vperm.xlu0 %2240, %v2545_v1   ;;  %v171_v45 = vrot.slane %v98_v30, %v2606_v35  ;;  %v167_v46 = vrot.slane %v98_v30, %v2608_v36  ;;  %v209_v49 = vrot.slane %v100_v32, %v2606_v35  ;;  %v205_v50 = vrot.slane %v100_v32, %v2608_v36  ;;  %s2421_s0 = smov 120   ;;  %s2423_s14 = smov 121  }
  0x62   :  { %vm264_vm3 = vcmp.lt.s32.totalorder %v2599_v26, 1  ;;  %vm302_vm4 = vcmp.lt.s32.totalorder %v2599_v26, 127  ;;  %vm340_vm5 = vcmp.lt.s32.totalorder %v2599_v26, 113  ;;  %vm378_vm6 = vcmp.lt.s32.totalorder %v2599_v26, 112  ;;  %s2424_s1 = smov 119  }
  0x63   :  { %vm416_vm7 = vcmp.lt.s32.totalorder %v2599_v26, 111  ;;  %v627_v26 = vld [vmem:[#allocation5 + $0x118] sm:$0xff] }
  0xdb   :  { %v121_v3 = vpop.permute.xlu0 %120 }
  0xdc   :  { %v123_v7 = vmul.f32 %v121_v3, %v113_v4  ;;  %v126_v8 = vmul.f32 %v121_v3, %v116_v5  ;;  %v124_v10 = vmul.f32 %v121_v3, %v114_v6  ;;  %v125_v17 = vmul.f32 %v121_v3, %v115_v13 }
  0xe0   :  { %v129_v9 = vpop.permute.xlu0 %128 }
  0xe1   :  { %v131_v11 = vadd.f32 %v129_v9, %v123_v7  ;;  %v134_v12 = vadd.f32 %v129_v9, %v126_v8  ;;  %v132_v14 = vadd.f32 %v129_v9, %v124_v10  ;;  %v133_v18 = vadd.f32 %v129_v9, %v125_v17  ;;  %v102_v8 = vld [vmem:[#allocation7 + $0x2] ss:$8 sm:$0xf]  ;;  %v104_v9 = vld [vmem:[#allocation7 + $0x3] ss:$8 sm:$0xf] }
  0xe2   :  { %v239_v13 = vrot.slane %v102_v8, %v2603_v31  ;;  %v277_v17 = vrot.slane %v104_v9, %v2603_v31  ;;  %v281_v32 = vrot.slane %v104_v9, %v2608_v36 }
  0xe3   :  { %v2549_v15 = vmax.f32 %v131_v11, 0.0  ;;  %v2551_v16 = vmax.f32 %v134_v12, 0.0  ;;  %v2555_v19 = vmax.f32 %v132_v14, 0.0  ;;  %v2559_v20 = vmax.f32 %v133_v18, 0.0 }
  0xe4   :  { %v235_v12 = vrot.slane %v102_v8, %v2601_v29  ;;  %v273_v14 = vrot.slane %v104_v9, %v2601_v29 }
  0xe5   :  { %146 = vrot.lane.b32.xlu0 %v2551_v16, %s2407_s5  ;;  %140 = vrot.lane.b32.xlu1 %v2549_v15, %s2407_s5 }
  0xe9   :  { %182 = vrot.lane.b32.xlu0 %v2555_v19, %s2408_s7  ;;  %142 = vrot.lane.b32.xlu1 %v2555_v19, %s2407_s5 }
  0xed   :  { %186 = vrot.lane.b32.xlu0 %v2551_v16, %s2408_s7  ;;  %144 = vrot.lane.b32.xlu1 %v2559_v20, %s2407_s5 }
  0xf1   :  { %220 = vrot.lane.b32.xlu0 %v2555_v19, %s2409_s13  ;;  %180 = vrot.lane.b32.xlu1 %v2549_v15, %s2408_s7 }
  0xf5   :  { %224 = vrot.lane.b32.xlu0 %v2551_v16, %s2409_s13  ;;  %184 = vrot.lane.b32.xlu1 %v2559_v20, %s2408_s7 }
  0xf9   :  { %258 = vrot.lane.b32.xlu0 %v2555_v19, %s2410_s15  ;;  %218 = vrot.lane.b32.xlu1 %v2549_v15, %s2409_s13 }
  0xfd   :  { %262 = vrot.lane.b32.xlu0 %v2551_v16, %s2410_s15  ;;  %222 = vrot.lane.b32.xlu1 %v2559_v20, %s2409_s13 }
 0x101   :  { %296 = vrot.lane.b32.xlu0 %v2555_v19, %s2411_s16  ;;  %256 = vrot.lane.b32.xlu1 %v2549_v15, %s2410_s15 }
 0x105   :  { %300 = vrot.lane.b32.xlu0 %v2551_v16, %s2411_s16  ;;  %260 = vrot.lane.b32.xlu1 %v2559_v20, %s2410_s15 }
 0x109   :  { %334 = vrot.lane.b32.xlu0 %v2555_v19, %s2412_s17  ;;  %294 = vrot.lane.b32.xlu1 %v2549_v15, %s2411_s16 }
 0x10d   :  { %338 = vrot.lane.b32.xlu0 %v2551_v16, %s2412_s17  ;;  %298 = vrot.lane.b32.xlu1 %v2559_v20, %s2411_s16 }
 0x111   :  { %372 = vrot.lane.b32.xlu0 %v2555_v19, %s2413_s18  ;;  %332 = vrot.lane.b32.xlu1 %v2549_v15, %s2412_s17 }
 0x115   :  { %376 = vrot.lane.b32.xlu0 %v2551_v16, %s2413_s18  ;;  %336 = vrot.lane.b32.xlu1 %v2559_v20, %s2412_s17 }
 0x119   :  { %410 = vrot.lane.b32.xlu0 %v2555_v19, %s2414_s19  ;;  %370 = vrot.lane.b32.xlu1 %v2549_v15, %s2413_s18 }
 0x11d   :  { %414 = vrot.lane.b32.xlu0 %v2551_v16, %s2414_s19  ;;  %374 = vrot.lane.b32.xlu1 %v2559_v20, %s2413_s18 }
 0x121   :  { %408 = vrot.lane.b32.xlu1 %v2549_v15, %s2414_s19 }
 0x125   :  { %412 = vrot.lane.b32.xlu1 %v2559_v20, %s2414_s19 }
 0x157   :  { %v147_v23 = vpop.permute.xlu0 %146  ;;  %v141_v24 = vpop.permute.xlu1 %140 }
 0x158   :  { %v154_v41 = vsel %vm150_vm0, %v147_v23, %v141_v24 }
 0x159   :  { %v176_v53 = vmul.f32 %v159_v37, %v154_v41 }
 0x15b   :  { %v183_v27 = vpop.permute.xlu0 %182  ;;  %v143_v28 = vpop.permute.xlu1 %142 }
 0x15c   :  { %v153_v42 = vsel %vm150_vm0, %v141_v24, %v143_v28  ;;  %v247_v24 = vrot.slane %v102_v8, %v2606_v35 }
 0x15d   :  { %v177_v51 = vmul.f32 %v163_v38, %v153_v42 }
 0x15f   :  { %v187_v33 = vpop.permute.xlu0 %186  ;;  %v145_v34 = vpop.permute.xlu1 %144 }
 0x160   :  { %v152_v55 = vsel %vm150_vm0, %v143_v28, %v145_v34  ;;  %v151_v56 = vsel %vm150_vm0, %v145_v34, %v147_v23  ;;  %v243_v23 = vrot.slane %v102_v8, %v2608_v36 }
 0x161   :  { %v179_v63 = vmul.f32 %v171_v45, %v151_v56  ;;  %v178_v2 = vmul.f32 %v167_v46, %v152_v55 }
 0x163   :  { %v221_v43 = vpop.permute.xlu0 %220  ;;  %v181_v44 = vpop.permute.xlu1 %180 }
 0x164   :  { %v192_v47 = vsel %vm188_vm1, %v187_v33, %v181_v44  ;;  %v191_v48 = vsel %vm188_vm1, %v181_v44, %v183_v27 }
 0x165   :  { %v215_v52 = vmul.f32 %v201_v39, %v191_v48  ;;  %v214_v54 = vmul.f32 %v197_v40, %v192_v47  ;;  %v106_v40 = vld [vmem:[#allocation7 + $0x5] ss:$8 sm:$0xf] }
 0x167   :  { %v225_v57 = vpop.permute.xlu0 %224  ;;  %v185_v58 = vpop.permute.xlu1 %184  ;;  %v2015_v59 = vpack.c.bf16 %v215_v52, %v177_v51  ;;  %v2017_v60 = vpack.c.bf16 %v214_v54, %v176_v53 }
 0x168   :  { %v190_v61 = vsel %vm188_vm1, %v183_v27, %v185_v58  ;;  %v189_v62 = vsel %vm188_vm1, %v185_v58, %v187_v33  ;;  %v285_v33 = vrot.slane %v104_v9, %v2606_v35 }
 0x169   :  { %2016 = vmatprep.subr.bf16.mxu0 %v2015_v59  ;;  %v217_v0 = vmul.f32 %v209_v49, %v189_v62  ;;  %v216_v3 = vmul.f32 %v205_v50, %v190_v61  ;;  %v323_v50 = vrot.slane %v106_v40, %v2606_v35  ;;  %v311_v59 = vrot.slane %v106_v40, %v2601_v29 }
 0x16a   :  { %2018 = vmatpush1.bf16.msra.mxu0 %v2017_v60  ;;  %v315_v62 = vrot.slane %v106_v40, %v2603_v31 }
 0x16b   :  { %v259_v4 = vpop.permute.xlu0 %258  ;;  %v219_v5 = vpop.permute.xlu1 %218  ;;  %v2031_v6 = vpack.c.bf16 %v217_v0, %v179_v63  ;;  %v2033_v7 = vpack.c.bf16 %v216_v3, %v178_v2  ;;  %v319_v63 = vrot.slane %v106_v40, %v2608_v36 }
 0x16c   :  { %v229_v18 = vsel %vm226_vm2, %v219_v5, %v221_v43  ;;  %v230_v22 = vsel %vm226_vm2, %v225_v57, %v219_v5 }
 0x16d   :  { %2032 = vmatprep.subr.bf16.mxu1 %v2031_v6  ;;  %v252_v34 = vmul.f32 %v235_v12, %v230_v22  ;;  %v253_v37 = vmul.f32 %v239_v13, %v229_v18 }
 0x16e   :  { %2034 = vmatpush1.bf16.msra.mxu1 %v2033_v7 }
 0x16f   :  { %v263_v10 = vpop.permute.xlu0 %262  ;;  %v223_v11 = vpop.permute.xlu1 %222 }
 0x170   :  { %v227_v41 = vsel %vm226_vm2, %v223_v11, %v225_v57  ;;  %v228_v42 = vsel %vm226_vm2, %v221_v43, %v223_v11 }
 0x171   :  { %v254_v51 = vmul.f32 %v243_v23, %v228_v42  ;;  %v255_v52 = vmul.f32 %v247_v24, %v227_v41  ;;  %v112_v42 = vld [vmem:[#allocation7 + $0x20] ss:$8 sm:$0xf] }
 0x173   :  { %v297_v25 = vpop.permute.xlu0 %296  ;;  %v257_v27 = vpop.permute.xlu1 %256 }
 0x174   :  { %v267_v28 = vsel %vm264_vm3, %v257_v27, %v259_v4  ;;  %v268_v30 = vsel %vm264_vm3, %v263_v10, %v257_v27 }
 0x175   :  { %v290_v38 = vmul.f32 %v273_v14, %v268_v30  ;;  %v291_v39 = vmul.f32 %v277_v17, %v267_v28  ;;  %v108_v14 = vld [vmem:[#allocation7 + $0x6] ss:$8 sm:$0xf]  ;;  %v110_v17 = vld [vmem:[#allocation7 + $0x7] ss:$8 sm:$0xf] }
 0x176   :  { %v361_v23 = vrot.slane %v108_v14, %v2606_v35  ;;  %v399_v24 = vrot.slane %v110_v17, %v2606_v35  ;;  %v353_v27 = vrot.slane %v108_v14, %v2603_v31  ;;  %v357_v30 = vrot.slane %v108_v14, %v2608_v36 }
 0x177   :  { %v301_v44 = vpop.permute.xlu0 %300  ;;  %v261_v45 = vpop.permute.xlu1 %260  ;;  %v2019_v46 = vpack.c.bf16 %v291_v39, %v253_v37  ;;  %v2021_v47 = vpack.c.bf16 %v290_v38, %v252_v34  ;;  %v391_v34 = vrot.slane %v110_v17, %v2603_v31  ;;  %v395_v41 = vrot.slane %v110_v17, %v2608_v36 }
 0x178   :  { %v265_v48 = vsel %vm264_vm3, %v261_v45, %v263_v10  ;;  %v266_v49 = vsel %vm264_vm3, %v259_v4, %v261_v45 }
 0x179   :  { %v292_v53 = vmul.f32 %v281_v32, %v266_v49  ;;  %v293_v54 = vmul.f32 %v285_v33, %v265_v48  ;;  %2020 = vmatprep.subr.bf16.mxu0 %v2019_v46  ;;  %v387_v33 = vrot.slane %v110_v17, %v2601_v29 }
 0x17a   :  { %2022 = vmatpush1.bf16.msra.mxu0 %v2021_v47 }
 0x17b   :  { %v335_v43 = vpop.permute.xlu0 %334  ;;  %v295_v55 = vpop.permute.xlu1 %294  ;;  %v2035_v56 = vpack.c.bf16 %v293_v54, %v255_v52  ;;  %v2037_v57 = vpack.c.bf16 %v292_v53, %v254_v51  ;;  %v437_v53 = vrot.slane %v112_v42, %v2606_v35  ;;  %v433_v35 = vrot.slane %v112_v42, %v2608_v36 }
 0x17c   :  { %v306_v58 = vsel %vm302_vm4, %v301_v44, %v295_v55  ;;  %v305_v60 = vsel %vm302_vm4, %v295_v55, %v297_v25 }
 0x17d   :  { %v331_v61 = vmul.f32 %v323_v50, %v306_v58  ;;  %2036 = vmatprep.subr.bf16.mxu1 %v2035_v56  ;;  %v328_v4 = vmul.f32 %v311_v59, %v305_v60 }
 0x17e   :  { %2038 = vmatpush1.bf16.msra.mxu1 %v2037_v57 }
 0x17f   :  { %v339_v0 = vpop.permute.xlu0 %338  ;;  %v299_v2 = vpop.permute.xlu1 %298  ;;  %v2039_v3 = vpack.c.bf16 %v331_v61, %v2551_v16  ;;  %v2025_v13 = vpack.c.bf16 %v328_v4, %v2549_v15  ;;  %v425_v4 = vrot.slane %v112_v42, %v2601_v29 }
 0x180   :  { %v303_v5 = vsel %vm302_vm4, %v299_v2, %v301_v44  ;;  %v304_v6 = vsel %vm302_vm4, %v297_v25, %v299_v2  ;;  %v349_v44 = vrot.slane %v108_v14, %v2601_v29  ;;  %v429_v2 = vrot.slane %v112_v42, %v2603_v31  ;;  %v642_v29 = vld [vmem:[#allocation5 + $0x190] sm:$0xff]  ;;  %v643_v14 = vld [vmem:[#allocation5 + $0x198] sm:$0xff]  ;;  %v612_v42 = vld [vmem:[#allocation5 + $0xa0] sm:$0xff] }
 0x181   :  { %v329_v7 = vmul.f32 %v315_v62, %v304_v6  ;;  %v330_v8 = vmul.f32 %v319_v63, %v303_v5  ;;  %2040 = vmatprep.subr.bf16.mxu1 %v2039_v3  ;;  %v640_v3 = vld [vmem:[#allocation5 + $0x180] sm:$0xff]  ;;  %v641_v5 = vld [vmem:[#allocation5 + $0x188] sm:$0xff] }
 0x182   :  { %v608_v6 = vld [vmem:[#allocation5 + $0x80] sm:$0xff] }
 0x183   :  { %v373_v9 = vpop.permute.xlu0 %372  ;;  %v333_v10 = vpop.permute.xlu1 %332  ;;  %v2023_v11 = vpack.c.bf16 %v329_v7, %v2555_v19  ;;  %v2041_v12 = vpack.c.bf16 %v330_v8, %v2559_v20  ;;  %v609_v7 = vld [vmem:[#allocation5 + $0x88] sm:$0xff] }
 0x184   :  { %v344_v25 = vsel %vm340_vm5, %v339_v0, %v333_v10  ;;  %v343_v47 = vsel %vm340_vm5, %v333_v10, %v335_v43  ;;  %v624_v10 = vld [vmem:[#allocation5 + $0x100] sm:$0xff] }
 0x185   :  { %2024 = vmatprep.subr.bf16.mxu0 %v2023_v11  ;;  %2042 = vmatpush1.bf16.msra.mxu1 %v2041_v12  ;;  %v369_v37 = vmul.f32 %v361_v23, %v344_v25  ;;  %v366_v58 = vmul.f32 %v349_v44, %v343_v47  ;;  %v625_v11 = vld [vmem:[#allocation5 + $0x108] sm:$0xff]  ;;  %v592_v12 = vld [vmem:[#allocation5] sm:$0xff]  ;;  %v2079_v23 = vpack.c.bf16 %v641_v5, %v640_v3  ;;  %v611_v25 = vld [vmem:[#allocation5 + $0x98] sm:$0xff] }
 0x186   :  { %2026 = vmatpush1.bf16.msra.mxu0 %v2025_v13  ;;  %v593_v13 = vld [vmem:[#allocation5 + $0x8] sm:$0xff] }
 0x187   :  { %v377_v18 = vpop.permute.xlu0 %376  ;;  %v337_v22 = vpop.permute.xlu1 %336  ;;  %v613_v44 = vld [vmem:[#allocation5 + $0xa8] sm:$0xff] }
 0x188   :  { %v341_v45 = vsel %vm340_vm5, %v337_v22, %v339_v0  ;;  %v342_v46 = vsel %vm340_vm5, %v335_v43, %v337_v22  ;;  %v139_v22 = vld [vmem:[#allocation10] sm:$0xff]  ;;  %v617_v3 = vld [vmem:[#allocation5 + $0xc8] sm:$0xff] }
 0x189   :  { %v367_v54 = vmul.f32 %v353_v27, %v342_v46  ;;  %v368_v55 = vmul.f32 %v357_v30, %v341_v45  ;;  %v2081_v30 = vpack.c.bf16 %v625_v11, %v624_v10  ;;  %v601_v11 = vld [vmem:[#allocation5 + $0x48] sm:$0xff] }
 0x18b   :  { %v371_v28 = vpop.permute.xlu1 %370  ;;  %v411_v38 = vpop.permute.xlu0 %410 }
 0x18c   :  { %v382_v32 = vsel %vm378_vm6, %v377_v18, %v371_v28  ;;  %v381_v39 = vsel %vm378_vm6, %v371_v28, %v373_v9  ;;  %v2047_v28 = vpack.c.bf16 %v609_v7, %v608_v6  ;;  %v632_v7 = vld [vmem:[#allocation5 + $0x140] sm:$0xff] }
 0x18d   :  { %v407_v40 = vmul.f32 %v399_v24, %v382_v32  ;;  %v404_v50 = vmul.f32 %v387_v33, %v381_v39  ;;  %v610_v24 = vld [vmem:[#allocation5 + $0x90] sm:$0xff]  ;;  %v2049_v32 = vpack.c.bf16 %v593_v13, %v592_v12  ;;  %v2083_v33 = vpack.c.bf16 %v643_v14, %v642_v29  ;;  %v595_v39 = vld [vmem:[#allocation5 + $0x18] sm:$0xff] }
 0x18e   :  { %v650_v12 = vld [vmem:[#allocation5 + $0x1d0] sm:$0xff]  ;;  %v619_v13 = vld [vmem:[#allocation5 + $0xd8] sm:$0xff] }
 0x18f   :  { %v375_v48 = vpop.permute.xlu1 %374  ;;  %v2043_v49 = vpack.c.bf16 %v407_v40, %v369_v37  ;;  %v415_v43 = vpop.permute.xlu0 %414  ;;  %v2029_v63 = vpack.c.bf16 %v404_v50, %v366_v58  ;;  %v594_v37 = vld [vmem:[#allocation5 + $0x10] sm:$0xff]  ;;  %v644_v40 = vld [vmem:[#allocation5 + $0x1a0] sm:$0xff] }
 0x190   :  { %v379_v51 = vsel %vm378_vm6, %v375_v48, %v377_v18  ;;  %v380_v52 = vsel %vm378_vm6, %v373_v9, %v375_v48  ;;  %v2053_v46 = vpack.c.bf16 %v595_v39, %v594_v37  ;;  %v628_v48 = vld [vmem:[#allocation5 + $0x120] sm:$0xff] }
 0x191   :  { %v405_v56 = vmul.f32 %v391_v34, %v380_v52  ;;  %v406_v57 = vmul.f32 %v395_v41, %v379_v51  ;;  %2044 = vmatprep.subr.bf16.mxu1 %v2043_v49  ;;  %v626_v34 = vld [vmem:[#allocation5 + $0x110] sm:$0xff]  ;;  %v645_v41 = vld [vmem:[#allocation5 + $0x1a8] sm:$0xff]  ;;  %v596_v50 = vld [vmem:[#allocation5 + $0x20] sm:$0xff]  ;;  %v2055_v51 = vpack.c.bf16 %v613_v44, %v612_v42 }
 0x192   :  { %v2085_v45 = vpack.c.bf16 %v627_v26, %v626_v34  ;;  %v2087_v47 = vpack.c.bf16 %v645_v41, %v644_v40  ;;  %v629_v49 = vld [vmem:[#allocation5 + $0x128] sm:$0xff]  ;;  %v636_v37 = vld [vmem:[#allocation5 + $0x160] sm:$0xff]  ;;  %v654_v42 = vld [vmem:[#allocation5 + $0x1f0] sm:$0xff] }
 0x193   :  { %v409_v59 = vpop.permute.xlu1 %408  ;;  %v2027_v60 = vpack.c.bf16 %v405_v56, %v367_v54  ;;  %v2045_v61 = vpack.c.bf16 %v406_v57, %v368_v55  ;;  %v597_v52 = vld [vmem:[#allocation5 + $0x28] sm:$0xff]  ;;  %v647_v54 = vld [vmem:[#allocation5 + $0x1b8] sm:$0xff]  ;;  %v614_v55 = vld [vmem:[#allocation5 + $0xb0] sm:$0xff]  ;;  %v2089_v57 = vpack.c.bf16 %v629_v49, %v628_v48 }
 0x194   :  { %v420_v62 = vsel %vm416_vm7, %v415_v43, %v409_v59  ;;  %v419_v8 = vsel %vm416_vm7, %v409_v59, %v411_v38  ;;  %v615_v56 = vld [vmem:[#allocation5 + $0xb8] sm:$0xff]  ;;  %v2057_v58 = vpack.c.bf16 %v597_v52, %v596_v50  ;;  %v630_v59 = vld [vmem:[#allocation5 + $0x130] sm:$0xff]  ;;  %v604_v39 = vld [vmem:[#allocation5 + $0x60] sm:$0xff] }
 0x195   :  { %v445_v0 = vmul.f32 %v437_v53, %v420_v62  ;;  %2028 = vmatprep.subr.bf16.mxu0 %v2027_v60  ;;  %2046 = vmatpush1.bf16.msra.mxu1 %v2045_v61  ;;  %v442_v27 = vmul.f32 %v425_v4, %v419_v8  ;;  %v646_v53 = vld [vmem:[#allocation5 + $0x1b0] sm:$0xff]  ;;  %v631_v60 = vld [vmem:[#allocation5 + $0x138] sm:$0xff]  ;;  %v2059_v62 = vpack.c.bf16 %v615_v56, %v614_v55  ;;  %v633_v8 = vld [vmem:[#allocation5 + $0x148] sm:$0xff] }
 0x196   :  { %2030 = vmatpush1.bf16.msra.mxu0 %v2029_v63  ;;  %v598_v61 = vld [vmem:[#allocation5 + $0x30] sm:$0xff]  ;;  %v599_v63 = vld [vmem:[#allocation5 + $0x38] sm:$0xff]  ;;  %v2093_v4 = vpack.c.bf16 %v631_v60, %v630_v59  ;;  %v2097_v29 = vpack.c.bf16 %v633_v8, %v632_v7  ;;  %v605_v41 = vld [vmem:[#allocation5 + $0x68] sm:$0xff] }
 0x197   :  { %v413_v9 = vpop.permute.xlu1 %412  ;;  %537 = vmatprep.subr.mxu1 %v445_v0  ;;  %v648_v0 = vld [vmem:[#allocation5 + $0x1c0] sm:$0xff]  ;;  %v2061_v5 = vpack.c.bf16 %v599_v63, %v598_v61  ;;  %v655_v44 = vld [vmem:[#allocation5 + $0x1f8] sm:$0xff]  ;;  %v622_v48 = vld [vmem:[#allocation5 + $0xf0] sm:$0xff] }
 0x198   :  { %v417_v31 = vsel %vm416_vm7, %v413_v9, %v415_v43  ;;  %v418_v36 = vsel %vm416_vm7, %v411_v38, %v413_v9  ;;  %v2051_v38 = vpack.c.bf16 %v611_v25, %v610_v24  ;;  %v2091_v43 = vpack.c.bf16 %v647_v54, %v646_v53  ;;  %v600_v9 = vld [vmem:[#allocation5 + $0x40] sm:$0xff]  ;;  %v603_v25 = vld [vmem:[#allocation5 + $0x58] sm:$0xff]  ;;  %v638_v50 = vld [vmem:[#allocation5 + $0x170] sm:$0xff] }
 0x199   :  { %v443_v17 = vmul.f32 %v429_v2, %v418_v36  ;;  %v444_v18 = vmul.f32 %v433_v35, %v417_v31  ;;  %v649_v2 = vld [vmem:[#allocation5 + $0x1c8] sm:$0xff]  ;;  %v616_v35 = vld [vmem:[#allocation5 + $0xc0] sm:$0xff]  ;;  %v651_v31 = vld [vmem:[#allocation5 + $0x1d8] sm:$0xff]  ;;  %v2065_v14 = vpack.c.bf16 %v601_v11, %v600_v9 }
 0x19a   :  { %v2095_v6 = vpack.c.bf16 %v649_v2, %v648_v0  ;;  %v2063_v10 = vpack.c.bf16 %v617_v3, %v616_v35  ;;  %v618_v36 = vld [vmem:[#allocation5 + $0xd0] sm:$0xff]  ;;  %v623_v49 = vld [vmem:[#allocation5 + $0xf8] sm:$0xff] }
 0x19b   :  { %466 = vmatprep.subr.mxu0 %v443_v17  ;;  %538 = vmatpush1.msra.mxu1 %v444_v18  ;;  %v2099_v17 = vpack.c.bf16 %v651_v31, %v650_v12  ;;  %v634_v18 = vld [vmem:[#allocation5 + $0x150] sm:$0xff]  ;;  %v2067_v24 = vpack.c.bf16 %v619_v13, %v618_v36  ;;  %v639_v52 = vld [vmem:[#allocation5 + $0x178] sm:$0xff]  ;;  %v2418_v12 = vmov 0.0|0.0   ;;  %v2425_v36 = vmov 4  }
 0x19c   :  { %467 = vmatpush1.msra.mxu0 %v442_v27  ;;  %1698 = vmatmul.mubr.msk.f32.vlgmr.msra.gmra.mrb[0].mxu1 %vm446_vm8, %v139_v22  ;;  %v652_v27 = vld [vmem:[#allocation5 + $0x1e0] sm:$0xff]  ;;  %v606_v53 = vld [vmem:[#allocation5 + $0x70] sm:$0xff]  ;;  %v607_v54 = vld [vmem:[#allocation5 + $0x78] sm:$0xff]  ;;  %v2109_v55 = vpack.c.bf16 %v639_v52, %v638_v50  ;;  %v2426_v13 = vmov 5  }
 0x19d   :  { %1697 = vmatmul.mubr.msk.f32.vlgmr.msra.gmra.mrb[0].mxu0 %vm446_vm8, %v139_v22  ;;  %2080 = vmatprep.subr.bf16.mxu1 %v2079_v23  ;;  %v635_v22 = vld [vmem:[#allocation5 + $0x158] sm:$0xff]  ;;  %v602_v23 = vld [vmem:[#allocation5 + $0x50] sm:$0xff]  ;;  %v2077_v56 = vpack.c.bf16 %v607_v54, %v606_v53 }
 0x19e   :  { %2048 = vmatprep.subr.bf16.mxu0 %v2047_v28  ;;  %2082 = vmatpush3.bf16.msra.mxu1 %v2081_v30  ;;  %v653_v28 = vld [vmem:[#allocation5 + $0x1e8] sm:$0xff]  ;;  %v620_v30 = vld [vmem:[#allocation5 + $0xe0] sm:$0xff]  ;;  %v2069_v34 = vpack.c.bf16 %v603_v25, %v602_v23  ;;  %v817_v50 = vld [vmem:[#allocation10 + $0x8] sm:$0xff] }
 0x19f   :  { %2050 = vmatpush3.bf16.msra.mxu0 %v2049_v32  ;;  %2084 = vmatprep.subr.bf16.mxu1 %v2083_v33  ;;  %v621_v32 = vld [vmem:[#allocation5 + $0xe8] sm:$0xff]  ;;  %v2101_v33 = vpack.c.bf16 %v635_v22, %v634_v18  ;;  %v2103_v26 = vpack.c.bf16 %v653_v28, %v652_v27  ;;  %v2745_v18 = vld [vmem:[#allocation8 + $0x1] ss:$0 sm:$0xff]  ;;  %v2749_v25 = vld [vmem:[#allocation8 + $0x2] ss:$0 sm:$0xff] }
 0x1a0   :  { %2052 = vmatprep.subr.bf16.mxu0 %v2051_v38  ;;  %v637_v38 = vld [vmem:[#allocation5 + $0x168] sm:$0xff]  ;;  %v2071_v40 = vpack.c.bf16 %v621_v32, %v620_v30  ;;  %v2751_v27 = vld [vmem:[#allocation8 + $0x3] ss:$0 sm:$0xff]  ;;  %v2753_v32 = vld [vmem:[#allocation8 + $0x5] ss:$0 sm:$0xff] }
 0x1a2   :  { %2086 = vmatpush3.bf16.msra.mxu1 %v2085_v45  ;;  %v2105_v45 = vpack.c.bf16 %v637_v38, %v636_v37 }
 0x1a3   :  { %2054 = vmatpush3.bf16.msra.mxu0 %v2053_v46  ;;  %2088 = vmatprep.subr.bf16.mxu1 %v2087_v47  ;;  %v2073_v46 = vpack.c.bf16 %v605_v41, %v604_v39  ;;  %v2107_v47 = vpack.c.bf16 %v655_v44, %v654_v42  ;;  %v2759_v39 = vld [vmem:[#allocation8 + $0x6] ss:$0 sm:$0xff]  ;;  %v2761_v41 = vld [vmem:[#allocation8 + $0x7] ss:$0 sm:$0xff] }
 0x1a4   :  { %2056 = vmatprep.subr.bf16.mxu0 %v2055_v51  ;;  %v2075_v51 = vpack.c.bf16 %v623_v49, %v622_v48  ;;  %v2767_v48 = vld [vmem:[#allocation8 + $0x8] ss:$0 sm:$0xff] }
 0x1a6   :  { %2090 = vmatpush3.bf16.msra.mxu1 %v2089_v57  ;;  %v2416_v57 = vmov 2  }
 0x1a7   :  { %2058 = vmatpush3.bf16.msra.mxu0 %v2057_v58  ;;  %2092 = vmatprep.subr.bf16.mxu1 %v2091_v43  ;;  %v2417_v58 = vmov 3  }
 0x1a8   :  { %2060 = vmatprep.subr.bf16.mxu0 %v2059_v62  ;;  %2241 = vset.pattern.permute.xlu1 %v2416_v57 }
 0x1a9   :  { %2242 = vset.pattern.permute.xlu0 %v2417_v58  ;;  %807 = vperm.xlu1 %2241, %v2545_v1  }
 0x1aa   :  { %2094 = vmatpush3.bf16.msra.mxu1 %v2093_v4  ;;  %812 = vperm.xlu0 %2242, %v2545_v1  }
 0x1ab   :  { %2062 = vmatpush3.bf16.msra.mxu0 %v2061_v5  ;;  %2096 = vmatprep.subr.bf16.mxu1 %v2095_v6 }
 0x1ac   :  { %2064 = vmatprep.subr.bf16.mxu0 %v2063_v10 }
 0x1ad   :  { %2244 = vset.pattern.permute.xlu1 %v2426_v13 }
 0x1ae   :  { %2098 = vmatpush3.bf16.msra.mxu1 %v2097_v29  ;;  %2243 = vset.pattern.permute.xlu0 %v2425_v36  ;;  %v1033_v36 = vld [vmem:[#allocation10 + $0x10] sm:$0xff] }
 0x1af   :  { %2066 = vmatpush3.bf16.msra.mxu0 %v2065_v14  ;;  %2100 = vmatprep.subr.bf16.mxu1 %v2099_v17  ;;  %v2743_v17 = vld [vmem:[#allocation8] ss:$0 sm:$0xff] }
 0x1b0   :  { %2068 = vmatprep.subr.bf16.mxu0 %v2067_v24 }
 0x1b2   :  { %2102 = vmatpush3.bf16.msra.mxu1 %v2101_v33 }
 0x1b3   :  { %2070 = vmatpush3.bf16.msra.mxu0 %v2069_v34  ;;  %2104 = vmatprep.subr.bf16.mxu1 %v2103_v26 }
 0x1b4   :  { %2072 = vmatprep.subr.bf16.mxu0 %v2071_v40 }
 0x1b6   :  { %2106 = vmatpush3.bf16.msra.mxu1 %v2105_v45 }
 0x1b7   :  { %2074 = vmatpush3.bf16.msra.mxu0 %v2073_v46  ;;  %2108 = vmatprep.subr.bf16.mxu1 %v2107_v47 }
 0x1b8   :  { %2076 = vmatprep.subr.bf16.mxu0 %v2075_v51  ;;  %v947_v51 = vld [vmem:[#allocation10 + $0x40] sm:$0xff] }
 0x1ba   :  { %2110 = vmatpush3.bf16.msra.mxu1 %v2109_v55 }
 0x1bb   :  { %2078 = vmatpush3.bf16.msra.mxu0 %v2077_v56  ;;  %2123 = vmatprep.subr.bf16.mxu1 %v2418_v12 }
 0x1bc   :  { %2111 = vmatprep.subr.bf16.mxu0 %v2418_v12 }
 0x228   :  { %v808_v5 = vpop.permute.xlu1 %807 }
 0x26f   :  { %v587_v43 = vpop.f32.mrb[0].mxu1 }
 0x270   :  { %v516_v59 = vpop.f32.mrb[0].mxu0  ;;  %v589_v60 = vpop.f32.mrb[1].mxu1 }
 0x271   :  { %v518_v61 = vpop.f32.mrb[1].mxu0  ;;  %795 = vmatprep.mubr.f32.mxu1 %v589_v60  ;;  %v2793_v60 = vld [vmem:[%s2960_s4] sm:$0xff]  ;;  %s2437_s4 = smov [#allocation11]  }
 0x272   :  { %720 = vmatprep.mubr.f32.mxu0 %v518_v61  ;;  %796 = vmatmul.mubr.f32.vlgmr.msra.gmra.mrb[2].mxu1 %v587_v43  ;;  %v2427_v43 = vmov 6  }
 0x273   :  { %721 = vmatmul.mubr.f32.vlgmr.msra.gmra.mrb[2].mxu0 %v516_v59  ;;  %800 = vmatprep.mubr.f32.mxu1 %v2551_v16  ;;  %v813_v16 = vpop.permute.xlu0 %812  ;;  %v2428_v59 = vmov 7  }
 0x274   :  { %725 = vmatprep.mubr.f32.mxu0 %v2555_v19 }
 0x276   :  { %801 = vmatmul.mubr.f32.gmra.mrb[4].mxu1 %v2559_v20 }
 0x277   :  { %726 = vmatmul.mubr.f32.gmra.mrb[4].mxu0 %v2549_v15  ;;  %1907 = vmatprep.mubr.msk.f32.mxu1 %vm2422_vm9, %v2415_v21 }
 0x278   :  { %1881 = vmatprep.mubr.msk.f32.mxu0 %vm2422_vm9, %v2415_v21 }
 0x345   :  { %v1785_v62 = vpop.f32.mrb[2].mxu1 }
 0x346   :  { %v1747_v63 = vpop.f32.mrb[2].mxu0  ;;  %v1786_v0 = vpop.f32.mrb[3].mxu1 }
 0x347   :  { %v1787_v2 = vadd.f32 %v1786_v0, %v1785_v62  ;;  %v1748_v35 = vpop.f32.mrb[3].mxu0 }
 0x348   :  { %v1749_v3 = vadd.f32 %v1748_v35, %v1747_v63 }
 0x349   :  { %v1788_v4 = vpop.f32.mrb[4].mxu1 }
 0x34a   :  { %v1750_v6 = vpop.f32.mrb[4].mxu0  ;;  %v1789_v7 = vpop.f32.mrb[5].mxu1  ;;  %v798_v8 = vadd.f32 %v1787_v2, %v1749_v3 }
 0x34b   :  { %v1790_v9 = vadd.f32 %v1789_v7, %v1788_v4  ;;  %v1751_v10 = vpop.f32.mrb[5].mxu0 }
 0x34c   :  { %v810_v11 = vmul.f32 %v808_v5, %v798_v8  ;;  %v1752_v19 = vadd.f32 %v1751_v10, %v1750_v6 }
 0x34e   :  { %v2727_v15 = vadd.f32 %v1790_v9, %v1752_v19  ;;  %v815_v20 = vadd.f32 %v813_v16, %v810_v11 }
 0x350   :  { %v816_v31 = vmax.f32 %v815_v20, 0.0 }
 0x352   :  { %832 = vrot.lane.b32.xlu0 %v816_v31, %s2419_s20  ;;  %818 = vrot.lane.b32.xlu1 %v816_v31, %s2420_s21 }
 0x356   :  { %846 = vrot.lane.b32.xlu0 %v816_v31, %s2411_s16  ;;  %825 = vrot.lane.b32.xlu1 %v816_v31, %s2398_s8 }
 0x35a   :  { %860 = vrot.lane.b32.xlu0 %v816_v31, %s2421_s0  ;;  %839 = vrot.lane.b32.xlu1 %v816_v31, %s2410_s15 }
 0x35e   :  { %853 = vrot.lane.b32.xlu1 %v816_v31, %s2423_s14  ;;  %1023 = vperm.xlu0 %2243, %v2545_v1  }
 0x362   :  { %867 = vrot.lane.b32.xlu1 %v816_v31, %s2424_s1  ;;  %2246 = vset.pattern.permute.xlu0 %v2428_v59 }
 0x366   :  { %1028 = vperm.xlu1 %2244, %v2545_v1  }
 0x36a   :  { %2245 = vset.pattern.permute.xlu1 %v2427_v43  ;;  %v1142_v43 = vld [vmem:[#allocation10 + $0x18] sm:$0xff] }
 0x3c4   :  { %v819_v29 = vpop.permute.xlu1 %818  ;;  %v833_v14 = vpop.permute.xlu0 %832 }
 0x3c5   :  { %v824_v23 = vmul.f32 %v2743_v17, %v819_v29  ;;  %v838_v33 = vmul.f32 %v2749_v25, %v833_v14 }
 0x3c8   :  { %v826_v22 = vpop.permute.xlu1 %825  ;;  %v847_v30 = vpop.permute.xlu0 %846 }
 0x3c9   :  { %v831_v24 = vmul.f32 %v2745_v18, %v826_v22  ;;  %v852_v26 = vmul.f32 %v2753_v32, %v847_v30  ;;  %v2429_v30 = vmov 8  }
 0x3cb   :  { %v2112_v28 = vpack.c.bf16 %v831_v24, %v824_v23  ;;  %v2118_v42 = vpack.c.bf16 %v852_v26, %v816_v31 }
 0x3cc   :  { %v840_v1 = vpop.permute.xlu1 %839  ;;  %v861_v40 = vpop.permute.xlu0 %860 }
 0x3cd   :  { %v845_v34 = vmul.f32 %v2751_v27, %v840_v1  ;;  %2113 = vmatpush3.bf16.msra.mxu0 %v2112_v28  ;;  %v866_v45 = vmul.f32 %v2761_v41, %v861_v40  ;;  %v2430_v1 = vmov 9  }
 0x3ce   :  { %2114 = vmatprep.subr.bf16.mxu0 %v2418_v12 }
 0x3cf   :  { %v2115_v37 = vpack.c.bf16 %v845_v34, %v838_v33 }
 0x3d0   :  { %v854_v38 = vpop.permute.xlu1 %853 }
 0x3d1   :  { %2116 = vmatpush3.bf16.msra.mxu0 %v2115_v37  ;;  %v859_v44 = vmul.f32 %v2759_v39, %v854_v38 }
 0x3d2   :  { %2117 = vmatprep.subr.bf16.mxu0 %v2418_v12 }
 0x3d3   :  { %v2121_v46 = vpack.c.bf16 %v866_v45, %v859_v44 }
 0x3d4   :  { %v868_v47 = vpop.permute.xlu1 %867 }
 0x3d5   :  { %2119 = vmatpush3.bf16.msra.mxu0 %v2118_v42  ;;  %v873_v49 = vmul.f32 %v2767_v48, %v868_v47 }
 0x3d6   :  { %2120 = vmatprep.subr.bf16.mxu0 %v2418_v12 }
 0x3d9   :  { %2122 = vmatpush3.bf16.msra.mxu0 %v2121_v46 }
 0x3da   :  { %1879 = vmatprep.subr.mxu0 %v2415_v21 }
 0x3dd   :  { %1880 = vmatpush3.msra.mxu0 %v873_v49  ;;  %v1024_v52 = vpop.permute.xlu0 %1023 }
 0x3de   :  { %1882 = vmatmul.mubr.msk.f32.vlgmr.msra.gmra.mrb[6].mxu0 %vm446_vm8, %v817_v50  ;;  %1884 = vmatprep.subr.mxu0 %v2415_v21 }
 0x3df   :  { %1885 = vmatpush3.msra.mxu0 %v2727_v15  ;;  %1886 = vmatprep.mubr.msk.f32.mxu0 %vm2422_vm9, %v2415_v21 }
 0x3e0   :  { %2147 = vmatprep.subr.bf16.mxu0 %v2418_v12 }
 0x3e5   :  { %v1029_v54 = vpop.permute.xlu1 %1028 }
 0x3e6   :  { %1887 = vmatmul.mubr.msk.f32.vlgmr.msra.gmra.mrb[6].mxu0 %vm948_vm10, %v947_v51 }
 0x3e7   :  { %1949 = vmatprep.mubr.msk.f32.mxu0 %vm2422_vm9, %v2415_v21 }
 0x4b9   :  { %v2779_v53 = vpop.f32.mrb[6].mxu0 }
 0x4ba   :  { %v1026_v55 = vmul.f32 %v1024_v52, %v2779_v53  ;;  %v1888_v56 = vpop.f32.mrb[7].mxu0 }
 0x4bc   :  { %v1031_v57 = vadd.f32 %v1029_v54, %v1026_v55 }
 0x4be   :  { %v1032_v58 = vmax.f32 %v1031_v57, 0.0 }
 0x4c0   :  { %1037 = vrot.lane.b32.xlu0 %v1032_v58, %s2398_s8  ;;  %1034 = vrot.lane.b32.xlu1 %v1032_v58, %s2420_s21 }
 0x4c4   :  { %1043 = vrot.lane.b32.xlu0 %v1032_v58, %s2410_s15  ;;  %1040 = vrot.lane.b32.xlu1 %v1032_v58, %s2419_s20 }
 0x4c8   :  { %1049 = vrot.lane.b32.xlu0 %v1032_v58, %s2423_s14  ;;  %1046 = vrot.lane.b32.xlu1 %v1032_v58, %s2411_s16 }
 0x4cc   :  { %1055 = vrot.lane.b32.xlu0 %v1032_v58, %s2424_s1  ;;  %1052 = vrot.lane.b32.xlu1 %v1032_v58, %s2421_s0 }
 0x4d0   :  { %1132 = vperm.xlu1 %2245, %v2793_v60   ;;  %1137 = vperm.xlu0 %2246, %v2793_v60  }
 0x4d4   :  { %2247 = vset.pattern.permute.xlu0 %v2429_v30  ;;  %2248 = vset.pattern.permute.xlu1 %v2430_v1  ;;  %v1252_v30 = vld [vmem:[#allocation10 + $0x20] sm:$0xff] }
 0x532   :  { %v1038_v61 = vpop.permute.xlu0 %1037  ;;  %v1035_v62 = vpop.permute.xlu1 %1034 }
 0x533   :  { %v1039_v63 = vmul.f32 %v2745_v18, %v1038_v61  ;;  %v1036_v0 = vmul.f32 %v2743_v17, %v1035_v62 }
 0x535   :  { %v2124_v2 = vpack.c.bf16 %v1039_v63, %v1036_v0 }
 0x536   :  { %v1044_v35 = vpop.permute.xlu0 %1043  ;;  %v1041_v3 = vpop.permute.xlu1 %1040 }
 0x537   :  { %v1045_v4 = vmul.f32 %v2751_v27, %v1044_v35  ;;  %v1042_v5 = vmul.f32 %v2749_v25, %v1041_v3  ;;  %2125 = vmatpush3.bf16.msra.mxu1 %v2124_v2 }
 0x538   :  { %2126 = vmatprep.subr.bf16.mxu1 %v2418_v12 }
 0x539   :  { %v2127_v6 = vpack.c.bf16 %v1045_v4, %v1042_v5  ;;  %v2432_v4 = vmov 11  }
 0x53a   :  { %v1047_v7 = vpop.permute.xlu1 %1046  ;;  %v1050_v9 = vpop.permute.xlu0 %1049 }
 0x53b   :  { %v1048_v8 = vmul.f32 %v2753_v32, %v1047_v7  ;;  %2128 = vmatpush3.bf16.msra.mxu1 %v2127_v6  ;;  %v1051_v11 = vmul.f32 %v2759_v39, %v1050_v9 }
 0x53c   :  { %2129 = vmatprep.subr.bf16.mxu1 %v2418_v12 }
 0x53d   :  { %v2130_v10 = vpack.c.bf16 %v1048_v8, %v1032_v58 }
 0x53e   :  { %v1053_v16 = vpop.permute.xlu1 %1052  ;;  %v1056_v20 = vpop.permute.xlu0 %1055 }
 0x53f   :  { %v1054_v19 = vmul.f32 %v2761_v41, %v1053_v16  ;;  %2131 = vmatpush3.bf16.msra.mxu1 %v2130_v10  ;;  %v1057_v31 = vmul.f32 %v2767_v48, %v1056_v20 }
 0x540   :  { %2132 = vmatprep.subr.bf16.mxu1 %v2418_v12 }
 0x541   :  { %v2133_v15 = vpack.c.bf16 %v1054_v19, %v1051_v11 }
 0x543   :  { %2134 = vmatpush3.bf16.msra.mxu1 %v2133_v15 }
 0x544   :  { %1905 = vmatprep.subr.mxu1 %v2415_v21 }
 0x547   :  { %1906 = vmatpush3.msra.mxu1 %v1057_v31 }
 0x548   :  { %1908 = vmatmul.mubr.msk.f32.vlgmr.msra.gmra.mrb[6].mxu1 %vm446_vm8, %v1033_v36  ;;  %2135 = vmatprep.subr.bf16.mxu1 %v2418_v12 }
 0x549   :  { %1928 = vmatprep.mubr.msk.f32.mxu1 %vm2422_vm9, %v2415_v21 }
 0x54f   :  { %v1133_v13 = vpop.permute.xlu1 %1132  ;;  %v1138_v14 = vpop.permute.xlu0 %1137 }
 0x61b   :  { %v1127_v29 = vpop.f32.mrb[6].mxu1 }
 0x61c   :  { %v1135_v22 = vmul.f32 %v1133_v13, %v1127_v29  ;;  %v1909_v23 = vpop.f32.mrb[7].mxu1 }
 0x61e   :  { %v1140_v24 = vadd.f32 %v1138_v14, %v1135_v22 }
 0x620   :  { %v1141_v28 = vmax.f32 %v1140_v24, 0.0 }
 0x622   :  { %1149 = vrot.lane.b32.xlu0 %v1141_v28, %s2419_s20  ;;  %1143 = vrot.lane.b32.xlu1 %v1141_v28, %s2420_s21 }
 0x626   :  { %1155 = vrot.lane.b32.xlu0 %v1141_v28, %s2411_s16  ;;  %1146 = vrot.lane.b32.xlu1 %v1141_v28, %s2398_s8 }
 0x62a   :  { %1161 = vrot.lane.b32.xlu0 %v1141_v28, %s2421_s0  ;;  %1152 = vrot.lane.b32.xlu1 %v1141_v28, %s2410_s15 }
 0x62e   :  { %1158 = vrot.lane.b32.xlu1 %v1141_v28, %s2423_s14  ;;  %1242 = vperm.xlu0 %2247, %v2793_v60  }
 0x632   :  { %1164 = vrot.lane.b32.xlu1 %v1141_v28, %s2424_s1  ;;  %2250 = vset.pattern.permute.xlu0 %v2432_v4 }
 0x636   :  { %1247 = vperm.xlu1 %2248, %v2793_v60  }
 0x694   :  { %v1144_v33 = vpop.permute.xlu1 %1143  ;;  %v1150_v34 = vpop.permute.xlu0 %1149 }
 0x695   :  { %v1145_v37 = vmul.f32 %v2743_v17, %v1144_v33  ;;  %v1151_v45 = vmul.f32 %v2749_v25, %v1150_v34 }
 0x698   :  { %v1147_v26 = vpop.permute.xlu1 %1146  ;;  %v1156_v42 = vpop.permute.xlu0 %1155 }
 0x699   :  { %v1148_v38 = vmul.f32 %v2745_v18, %v1147_v26  ;;  %v1157_v47 = vmul.f32 %v2753_v32, %v1156_v42  ;;  %v2433_v42 = vmov 12  }
 0x69b   :  { %v2136_v40 = vpack.c.bf16 %v1148_v38, %v1145_v37  ;;  %v2142_v52 = vpack.c.bf16 %v1157_v47, %v1141_v28 }
 0x69c   :  { %v1153_v44 = vpop.permute.xlu1 %1152  ;;  %v1162_v51 = vpop.permute.xlu0 %1161 }
 0x69d   :  { %v1154_v46 = vmul.f32 %v2751_v27, %v1153_v44  ;;  %2137 = vmatpush3.bf16.msra.mxu1 %v2136_v40  ;;  %v1163_v55 = vmul.f32 %v2761_v41, %v1162_v51  ;;  %v2434_v44 = vmov 13  }
 0x69e   :  { %2138 = vmatprep.subr.bf16.mxu1 %v2418_v12 }
 0x69f   :  { %v2139_v49 = vpack.c.bf16 %v1154_v46, %v1151_v45 }
 0x6a0   :  { %v1159_v50 = vpop.permute.xlu1 %1158 }
 0x6a1   :  { %2140 = vmatpush3.bf16.msra.mxu1 %v2139_v49  ;;  %v1160_v54 = vmul.f32 %v2759_v39, %v1159_v50 }
 0x6a2   :  { %2141 = vmatprep.subr.bf16.mxu1 %v2418_v12 }
 0x6a3   :  { %v2145_v56 = vpack.c.bf16 %v1163_v55, %v1160_v54 }
 0x6a4   :  { %v1165_v57 = vpop.permute.xlu1 %1164 }
 0x6a5   :  { %2143 = vmatpush3.bf16.msra.mxu1 %v2142_v52  ;;  %v1166_v58 = vmul.f32 %v2767_v48, %v1165_v57 }
 0x6a6   :  { %2144 = vmatprep.subr.bf16.mxu1 %v2418_v12 }
 0x6a9   :  { %2146 = vmatpush3.bf16.msra.mxu1 %v2145_v56 }
 0x6aa   :  { %1926 = vmatprep.subr.mxu1 %v2415_v21 }
 0x6ad   :  { %1927 = vmatpush3.msra.mxu1 %v1166_v58  ;;  %v1243_v61 = vpop.permute.xlu0 %1242 }
 0x6ae   :  { %1929 = vmatmul.mubr.msk.f32.vlgmr.msra.gmra.mrb[8].mxu1 %vm446_vm8, %v1142_v43  ;;  %2159 = vmatprep.subr.bf16.mxu1 %v2418_v12 }
 0x6af   :  { %1970 = vmatprep.mubr.msk.f32.mxu1 %vm2422_vm9, %v2415_v21 }
 0x6b5   :  { %v1248_v0 = vpop.permute.xlu1 %1247 }
 0x781   :  { %v1236_v59 = vpop.f32.mrb[8].mxu1 }
 0x782   :  { %v2840_v62 = vadd.f32 %v1236_v59, %v2779_v53  ;;  %v1930_v63 = vpop.f32.mrb[9].mxu1  ;;  %v2431_v53 = vmov 10  }
 0x783   :  { %2249 = vset.pattern.permute.xlu1 %v2431_v53  ;;  %v1361_v53 = vld [vmem:[#allocation10 + $0x28] sm:$0xff] }
 0x784   :  { %v1245_v2 = vmul.f32 %v1243_v61, %v2840_v62 }
 0x786   :  { %v1250_v35 = vadd.f32 %v1248_v0, %v1245_v2 }
 0x788   :  { %v1251_v3 = vmax.f32 %v1250_v35, 0.0 }
 0x78a   :  { %1256 = vrot.lane.b32.xlu0 %v1251_v3, %s2398_s8  ;;  %1253 = vrot.lane.b32.xlu1 %v1251_v3, %s2420_s21 }
 0x78e   :  { %1262 = vrot.lane.b32.xlu0 %v1251_v3, %s2410_s15  ;;  %1259 = vrot.lane.b32.xlu1 %v1251_v3, %s2419_s20 }
 0x792   :  { %1268 = vrot.lane.b32.xlu0 %v1251_v3, %s2423_s14  ;;  %1265 = vrot.lane.b32.xlu1 %v1251_v3, %s2411_s16 }
 0x796   :  { %1274 = vrot.lane.b32.xlu0 %v1251_v3, %s2424_s1  ;;  %1271 = vrot.lane.b32.xlu1 %v1251_v3, %s2421_s0 }
 0x79a   :  { %1351 = vperm.xlu1 %2249, %v2793_v60   ;;  %1356 = vperm.xlu0 %2250, %v2793_v60  }
 0x79e   :  { %2251 = vset.pattern.permute.xlu0 %v2433_v42  ;;  %2252 = vset.pattern.permute.xlu1 %v2434_v44 }
 0x7fc   :  { %v1257_v5 = vpop.permute.xlu0 %1256  ;;  %v1254_v6 = vpop.permute.xlu1 %1253 }
 0x7fd   :  { %v1258_v7 = vmul.f32 %v2745_v18, %v1257_v5  ;;  %v1255_v8 = vmul.f32 %v2743_v17, %v1254_v6 }
 0x7ff   :  { %v2148_v9 = vpack.c.bf16 %v1258_v7, %v1255_v8 }
 0x800   :  { %v1263_v10 = vpop.permute.xlu0 %1262  ;;  %v1260_v16 = vpop.permute.xlu1 %1259 }
 0x801   :  { %v1264_v11 = vmul.f32 %v2751_v27, %v1263_v10  ;;  %v1261_v19 = vmul.f32 %v2749_v25, %v1260_v16  ;;  %2149 = vmatpush3.bf16.msra.mxu0 %v2148_v9 }
 0x802   :  { %2150 = vmatprep.subr.bf16.mxu0 %v2418_v12 }
 0x803   :  { %v2151_v15 = vpack.c.bf16 %v1264_v11, %v1261_v19  ;;  %v2436_v11 = vmov 15  }
 0x804   :  { %v1266_v20 = vpop.permute.xlu1 %1265  ;;  %v1269_v36 = vpop.permute.xlu0 %1268 }
 0x805   :  { %v1267_v31 = vmul.f32 %v2753_v32, %v1266_v20  ;;  %2152 = vmatpush3.bf16.msra.mxu0 %v2151_v15  ;;  %v1270_v14 = vmul.f32 %v2759_v39, %v1269_v36 }
 0x806   :  { %2153 = vmatprep.subr.bf16.mxu0 %v2418_v12 }
 0x807   :  { %v2154_v13 = vpack.c.bf16 %v1267_v31, %v1251_v3 }
 0x808   :  { %v1272_v29 = vpop.permute.xlu1 %1271  ;;  %v1275_v24 = vpop.permute.xlu0 %1274 }
 0x809   :  { %v1273_v22 = vmul.f32 %v2761_v41, %v1272_v29  ;;  %2155 = vmatpush3.bf16.msra.mxu0 %v2154_v13  ;;  %v1276_v28 = vmul.f32 %v2767_v48, %v1275_v24 }
 0x80a   :  { %2156 = vmatprep.subr.bf16.mxu0 %v2418_v12 }
 0x80b   :  { %v2157_v23 = vpack.c.bf16 %v1273_v22, %v1270_v14 }
 0x80d   :  { %2158 = vmatpush3.bf16.msra.mxu0 %v2157_v23 }
 0x80e   :  { %1947 = vmatprep.subr.mxu0 %v2415_v21 }
 0x811   :  { %1948 = vmatpush3.msra.mxu0 %v1276_v28 }
 0x812   :  { %1950 = vmatmul.mubr.msk.f32.vlgmr.msra.gmra.mrb[8].mxu0 %vm446_vm8, %v1252_v30  ;;  %2171 = vmatprep.subr.bf16.mxu0 %v2418_v12 }
 0x813   :  { %1991 = vmatprep.mubr.msk.f32.mxu0 %vm2422_vm9, %v2415_v21 }
 0x819   :  { %v1352_v1 = vpop.permute.xlu1 %1351  ;;  %v1357_v34 = vpop.permute.xlu0 %1356 }
 0x8e5   :  { %v1346_v33 = vpop.f32.mrb[8].mxu0 }
 0x8e6   :  { %v1354_v26 = vmul.f32 %v1352_v1, %v1346_v33  ;;  %v1951_v37 = vpop.f32.mrb[9].mxu0 }
 0x8e8   :  { %v1359_v38 = vadd.f32 %v1357_v34, %v1354_v26 }
 0x8ea   :  { %v1360_v40 = vmax.f32 %v1359_v38, 0.0 }
 0x8ec   :  { %1368 = vrot.lane.b32.xlu0 %v1360_v40, %s2419_s20  ;;  %1362 = vrot.lane.b32.xlu1 %v1360_v40, %s2420_s21 }
 0x8f0   :  { %1374 = vrot.lane.b32.xlu0 %v1360_v40, %s2411_s16  ;;  %1365 = vrot.lane.b32.xlu1 %v1360_v40, %s2398_s8 }
 0x8f4   :  { %1380 = vrot.lane.b32.xlu0 %v1360_v40, %s2421_s0  ;;  %1371 = vrot.lane.b32.xlu1 %v1360_v40, %s2410_s15 }
 0x8f8   :  { %1377 = vrot.lane.b32.xlu1 %v1360_v40, %s2423_s14  ;;  %1461 = vperm.xlu0 %2251, %v2793_v60  }
 0x8fc   :  { %1383 = vrot.lane.b32.xlu1 %v1360_v40, %s2424_s1  ;;  %2254 = vset.pattern.permute.xlu0 %v2436_v11 }
 0x900   :  { %1466 = vperm.xlu1 %2252, %v2793_v60  }
 0x95e   :  { %v1363_v45 = vpop.permute.xlu1 %1362  ;;  %v1369_v46 = vpop.permute.xlu0 %1368 }
 0x95f   :  { %v1364_v49 = vmul.f32 %v2743_v17, %v1363_v45  ;;  %v1370_v55 = vmul.f32 %v2749_v25, %v1369_v46 }
 0x962   :  { %v1366_v47 = vpop.permute.xlu1 %1365  ;;  %v1375_v52 = vpop.permute.xlu0 %1374 }
 0x963   :  { %v1367_v50 = vmul.f32 %v2745_v18, %v1366_v47  ;;  %v1376_v57 = vmul.f32 %v2753_v32, %v1375_v52 }
 0x965   :  { %v2160_v51 = vpack.c.bf16 %v1367_v50, %v1364_v49  ;;  %v2166_v61 = vpack.c.bf16 %v1376_v57, %v1360_v40  ;;  %v1471_v40 = vld [vmem:[#allocation10 + $0x30] sm:$0xff] }
 0x966   :  { %v1372_v54 = vpop.permute.xlu1 %1371  ;;  %v1381_v59 = vpop.permute.xlu0 %1380 }
 0x967   :  { %v1373_v56 = vmul.f32 %v2751_v27, %v1372_v54  ;;  %2161 = vmatpush3.bf16.msra.mxu1 %v2160_v51  ;;  %v1382_v0 = vmul.f32 %v2761_v41, %v1381_v59 }
 0x968   :  { %2162 = vmatprep.subr.bf16.mxu1 %v2418_v12 }
 0x969   :  { %v2163_v58 = vpack.c.bf16 %v1373_v56, %v1370_v55 }
 0x96a   :  { %v1378_v43 = vpop.permute.xlu1 %1377 }
 0x96b   :  { %2164 = vmatpush3.bf16.msra.mxu1 %v2163_v58  ;;  %v1379_v63 = vmul.f32 %v2759_v39, %v1378_v43 }
 0x96c   :  { %2165 = vmatprep.subr.bf16.mxu1 %v2418_v12 }
 0x96d   :  { %v2169_v2 = vpack.c.bf16 %v1382_v0, %v1379_v63 }
 0x96e   :  { %v1384_v35 = vpop.permute.xlu1 %1383 }
 0x96f   :  { %2167 = vmatpush3.bf16.msra.mxu1 %v2166_v61  ;;  %v1385_v3 = vmul.f32 %v2767_v48, %v1384_v35 }
 0x970   :  { %2168 = vmatprep.subr.bf16.mxu1 %v2418_v12 }
 0x973   :  { %2170 = vmatpush3.bf16.msra.mxu1 %v2169_v2 }
 0x974   :  { %1968 = vmatprep.subr.mxu1 %v2415_v21 }
 0x977   :  { %1969 = vmatpush3.msra.mxu1 %v1385_v3  ;;  %v1462_v5 = vpop.permute.xlu0 %1461 }
 0x978   :  { %1971 = vmatmul.mubr.msk.f32.vlgmr.msra.gmra.mrb[10].mxu1 %vm446_vm8, %v1361_v53  ;;  %2183 = vmatprep.subr.bf16.mxu1 %v2418_v12  ;;  %v1580_v53 = vld [vmem:[#allocation10 + $0x38] sm:$0xff] }
 0x979   :  { %2012 = vmatprep.mubr.msk.f32.mxu1 %vm2422_vm9, %v2415_v21 }
 0x97f   :  { %v1467_v8 = vpop.permute.xlu1 %1466 }
 0xa4b   :  { %v1455_v4 = vpop.f32.mrb[10].mxu1 }
 0xa4c   :  { %v2896_v6 = vadd.f32 %v1455_v4, %v2840_v62  ;;  %v1972_v7 = vpop.f32.mrb[11].mxu1  ;;  %v2435_v62 = vmov 14  }
 0xa4d   :  { %2253 = vset.pattern.permute.xlu1 %v2435_v62 }
 0xa4e   :  { %v1464_v9 = vmul.f32 %v1462_v5, %v2896_v6 }
 0xa50   :  { %v1469_v10 = vadd.f32 %v1467_v8, %v1464_v9 }
 0xa52   :  { %v1470_v16 = vmax.f32 %v1469_v10, 0.0 }
 0xa54   :  { %1475 = vrot.lane.b32.xlu0 %v1470_v16, %s2398_s8  ;;  %1472 = vrot.lane.b32.xlu1 %v1470_v16, %s2420_s21 }
 0xa58   :  { %1481 = vrot.lane.b32.xlu0 %v1470_v16, %s2410_s15  ;;  %1478 = vrot.lane.b32.xlu1 %v1470_v16, %s2419_s20 }
 0xa5c   :  { %1487 = vrot.lane.b32.xlu0 %v1470_v16, %s2423_s14  ;;  %1484 = vrot.lane.b32.xlu1 %v1470_v16, %s2411_s16 }
 0xa60   :  { %1493 = vrot.lane.b32.xlu0 %v1470_v16, %s2424_s1  ;;  %1490 = vrot.lane.b32.xlu1 %v1470_v16, %s2421_s0 }
 0xa64   :  { %1570 = vperm.xlu1 %2253, %v2793_v60   ;;  %1575 = vperm.xlu0 %2254, %v2793_v60  }
 0xac6   :  { %v1476_v19 = vpop.permute.xlu0 %1475  ;;  %v1473_v15 = vpop.permute.xlu1 %1472 }
 0xac7   :  { %v1477_v20 = vmul.f32 %v2745_v18, %v1476_v19  ;;  %v1474_v31 = vmul.f32 %v2743_v17, %v1473_v15 }
 0xac9   :  { %v2172_v36 = vpack.c.bf16 %v1477_v20, %v1474_v31 }
 0xaca   :  { %v1482_v13 = vpop.permute.xlu0 %1481  ;;  %v1479_v29 = vpop.permute.xlu1 %1478 }
 0xacb   :  { %v1483_v14 = vmul.f32 %v2751_v27, %v1482_v13  ;;  %v1480_v22 = vmul.f32 %v2749_v25, %v1479_v29  ;;  %2173 = vmatpush3.bf16.msra.mxu0 %v2172_v36 }
 0xacc   :  { %2174 = vmatprep.subr.bf16.mxu0 %v2418_v12 }
 0xacd   :  { %v2175_v23 = vpack.c.bf16 %v1483_v14, %v1480_v22 }
 0xace   :  { %v1485_v24 = vpop.permute.xlu1 %1484  ;;  %v1488_v28 = vpop.permute.xlu0 %1487 }
 0xacf   :  { %v1486_v60 = vmul.f32 %v2753_v32, %v1485_v24  ;;  %2176 = vmatpush3.bf16.msra.mxu0 %v2175_v23  ;;  %v1489_v33 = vmul.f32 %v2759_v39, %v1488_v28 }
 0xad0   :  { %2177 = vmatprep.subr.bf16.mxu0 %v2418_v12 }
 0xad1   :  { %v2178_v30 = vpack.c.bf16 %v1486_v60, %v1470_v16 }
 0xad2   :  { %v1491_v1 = vpop.permute.xlu1 %1490  ;;  %v1494_v37 = vpop.permute.xlu0 %1493 }
 0xad3   :  { %v1492_v34 = vmul.f32 %v2761_v41, %v1491_v1  ;;  %2179 = vmatpush3.bf16.msra.mxu0 %v2178_v30  ;;  %v1495_v38 = vmul.f32 %v2767_v48, %v1494_v37 }
 0xad4   :  { %2180 = vmatprep.subr.bf16.mxu0 %v2418_v12 }
 0xad5   :  { %v2181_v26 = vpack.c.bf16 %v1492_v34, %v1489_v33 }
 0xad7   :  { %2182 = vmatpush3.bf16.msra.mxu0 %v2181_v26 }
 0xad8   :  { %1989 = vmatprep.subr.mxu0 %v2415_v21 }
 0xadb   :  { %1990 = vmatpush3.msra.mxu0 %v1495_v38 }
 0xadc   :  { %1992 = vmatmul.mubr.msk.f32.vlgmr.msra.gmra.mrb[10].mxu0 %vm446_vm8, %v1471_v40 }
 0xae3   :  { %v1571_v42 = vpop.permute.xlu1 %1570  ;;  %v1576_v45 = vpop.permute.xlu0 %1575 }
 0xbaf   :  { %v1565_v44 = vpop.f32.mrb[10].mxu0 }
 0xbb0   :  { %v1573_v46 = vmul.f32 %v1571_v42, %v1565_v44  ;;  %v1993_v47 = vpop.f32.mrb[11].mxu0 }
 0xbb2   :  { %v1578_v49 = vadd.f32 %v1576_v45, %v1573_v46 }
 0xbb4   :  { %v1579_v50 = vmax.f32 %v1578_v49, 0.0 }
 0xbb6   :  { %1587 = vrot.lane.b32.xlu0 %v1579_v50, %s2419_s20  ;;  %1581 = vrot.lane.b32.xlu1 %v1579_v50, %s2420_s21 }
 0xbba   :  { %1593 = vrot.lane.b32.xlu0 %v1579_v50, %s2411_s16  ;;  %1584 = vrot.lane.b32.xlu1 %v1579_v50, %s2398_s8  ;;  %s1686_s8 = sshll.u32 %s2437_s4, 4  ;;  %s1687_s8 = int_to_ptr.vmem [resolvable:$true] %s1686_s8 }
 0xbbb   :  { %s2366_s24 = scalar_lea.vmem %s1687_s8, 128  ;;  %p2371_p13 = scmp.lt.s32.totalorder %s1687_s8, %s1687_s8 }
 0xbbc   :  { %p2367_p12 = scmp.ne.s32.totalorder %s1687_s8, %s2366_s24  ;;  %p2372_p0 = scmp.lt.s32.totalorder %s2366_s24, %s2366_s24 }
 0xbbe   :  { %1599 = vrot.lane.b32.xlu0 %v1579_v50, %s2421_s0  ;;  %1590 = vrot.lane.b32.xlu1 %v1579_v50, %s2410_s15  ;;  %p2373_p1 = por %p2372_p0, %p2371_p13 }
 0xbc0   :  { %p2374_p2 = pnand %p2373_p1, %p2367_p12 }
 0xbc2   :  { %1596 = vrot.lane.b32.xlu1 %v1579_v50, %s2423_s14 }
 0xbc6   :  { %1602 = vrot.lane.b32.xlu1 %v1579_v50, %s2424_s1 }
 0xc28   :  { %v1582_v51 = vpop.permute.xlu1 %1581  ;;  %v1588_v52 = vpop.permute.xlu0 %1587 }
 0xc29   :  { %v1583_v55 = vmul.f32 %v2743_v17, %v1582_v51  ;;  %v1589_v59 = vmul.f32 %v2749_v25, %v1588_v52 }
 0xc2c   :  { %v1585_v54 = vpop.permute.xlu1 %1584  ;;  %v1594_v58 = vpop.permute.xlu0 %1593 }
 0xc2d   :  { %v1586_v56 = vmul.f32 %v2745_v18, %v1585_v54  ;;  %v1595_v63 = vmul.f32 %v2753_v32, %v1594_v58 }
 0xc2f   :  { %v2184_v57 = vpack.c.bf16 %v1586_v56, %v1583_v55  ;;  %v2190_v17 = vpack.c.bf16 %v1595_v63, %v1579_v50 }
 0xc30   :  { %v1591_v43 = vpop.permute.xlu1 %1590  ;;  %v1600_v35 = vpop.permute.xlu0 %1599 }
 0xc31   :  { %v1592_v61 = vmul.f32 %v2751_v27, %v1591_v43  ;;  %2185 = vmatpush3.bf16.msra.mxu1 %v2184_v57  ;;  %v1601_v3 = vmul.f32 %v2761_v41, %v1600_v35 }
 0xc32   :  { %2186 = vmatprep.subr.bf16.mxu1 %v2418_v12 }
 0xc33   :  { %v2187_v0 = vpack.c.bf16 %v1592_v61, %v1589_v59 }
 0xc34   :  { %v1597_v2 = vpop.permute.xlu1 %1596 }
 0xc35   :  { %2188 = vmatpush3.bf16.msra.mxu1 %v2187_v0  ;;  %v1598_v18 = vmul.f32 %v2759_v39, %v1597_v2 }
 0xc36   :  { %2189 = vmatprep.subr.bf16.mxu1 %v2418_v12 }
 0xc37   :  { %v2193_v25 = vpack.c.bf16 %v1601_v3, %v1598_v18 }
 0xc38   :  { %v1603_v27 = vpop.permute.xlu1 %1602 }
 0xc39   :  { %2191 = vmatpush3.bf16.msra.mxu1 %v2190_v17  ;;  %v1604_v32 = vmul.f32 %v2767_v48, %v1603_v27 }
 0xc3a   :  { %2192 = vmatprep.subr.bf16.mxu1 %v2418_v12 }
 0xc3d   :  { %2194 = vmatpush3.bf16.msra.mxu1 %v2193_v25 }
 0xc3e   :  { %2010 = vmatprep.subr.mxu1 %v2415_v21 }
 0xc41   :  { %2011 = vmatpush3.msra.mxu1 %v1604_v32 }
 0xc42   :  { %2013 = vmatmul.mubr.msk.f32.vlgmr.msra.gmra.mrb[12].mxu1 %vm446_vm8, %v1580_v53 }
 0xd15   :  { %v1674_v4 = vpop.f32.mrb[12].mxu1 }
 0xd16   :  { %v1678_v39 = vadd.f32 %v1674_v4, %v2896_v6  ;;  %v2014_v41 = vpop.f32.mrb[13].mxu1 }
 0xd18   :  { %1679 = vst [vmem:[#allocation11] sm:$0xff] %v1678_v39 }
 0xd19   :  { %2377 = shalt.err (!%p2374_p2)
}
 0xd1a   :  { %s2378_s27 = scalar_lea.hbm %s2962_s6, 128 }
 0xd1b   :  { %p2379_p3 = scmp.ne.s32.totalorder %s2962_s6, %s2378_s27  ;;  %p2382_p4 = scmp.lt.u32.totalorder %s2378_s27, %s2962_s6 }
 0xd1d   :  { %p2384_p5 = pnand %p2382_p4, %p2379_p3 }
 0xd1f   :  { %2387 = shalt.err (!%p2384_p5)
}
 0xd20   :  { %1689 = dma.vmem_to_hbm [thread:$0]  %s1687_s8, 128, %s2962_s6, [#allocation4]  }
 0xd21   :  { %2394 = dma.done.wait [#allocation4], 128  }
 0xd22   :  { %2395 = vsyncadd [#allocation4], 4294967168 }
 0xd23   :  { %1693 = vsyncpa [#allocation3], 1 }
 0xd24   :  { %1694 = vsyncpa [#allocation6], 1 }
 0xd25   :  { %1695 = vsyncpa [#allocation9], 1 }
 0xd26   :  { %1696 = vsyncpa [#allocation4], 1 }

</bundles_post_ra>
